<compile_context>
chip_gen: v7x
topology: tpu7x:2x2x1
jax: 0.10.0
libtpu: 0.0.40
codegen_flags: <defaults>
</compile_context>

<pallas_src>
import jax
import jax.numpy as jnp
from jax.experimental import pallas as pl
from jax.experimental.pallas import tpu as pltpu


# ---------------------------------------------------------------------------
# Fused Pallas kernel
# ---------------------------------------------------------------------------

def _fused_sage_kernel(x0_ref, a_ref, dinv_ref, wl_ref, bl_ref, wr_ref,
                       p_ref, w1_ref, b1_ref, w2_ref, b2_ref,
                       out_ref, acc_ref, hbuf_ref):
    l = pl.program_id(0)          # layer (0..2)
    r = pl.program_id(1)          # row tile of A
    k = pl.program_id(2)          # K tile of A (reduction axis, last)
    nl = pl.num_programs(0)
    nr = pl.num_programs(1)
    nk = pl.num_programs(2)
    tm, tk = a_ref.shape

    cur = l % 2                   # ping-pong read slot for this layer
    nxt = (l + 1) % 2             # write slot

    # One-time init: stage embedded node features into slot 0, clear output.
    @pl.when((l == 0) & (r == 0) & (k == 0))
    def _():
        hbuf_ref[0] = x0_ref[...]
        out_ref[...] = jnp.zeros_like(out_ref)

    # K-axis accumulator init for this row tile.
    @pl.when(k == 0)
    def _():
        acc_ref[...] = jnp.zeros_like(acc_ref)

    # Partial (un-normalized) aggregation: counts A[r,k] @ h[k].
    # int8 counts -> bf16 for the MXU, f32 accumulation.
    koff = pl.multiple_of(k * tk, tk)
    h_k = hbuf_ref[cur, pl.ds(koff, tk), :]                    # bf16 (tk, cp)
    acc_ref[...] += jnp.dot(a_ref[...].astype(jnp.bfloat16), h_k,
                            preferred_element_type=jnp.float32)

    # Layer epilogue (last K tile): apply f32 1/deg, lin_l + bias + lin_r,
    # L2-normalize via rsqrt, ReLU after conv1/conv2 only, store to next slot.
    @pl.when(k == nk - 1)
    def _():
        roff = pl.multiple_of(r * tm, tm)
        agg = acc_ref[...] * dinv_ref[pl.ds(roff, tm), :]      # f32 mean aggregation
        x_root = hbuf_ref[cur, pl.ds(roff, tm), :]             # bf16 root features
        h = (jnp.dot(agg.astype(jnp.bfloat16), wl_ref[...],
                     preferred_element_type=jnp.float32)
             + jnp.dot(x_root, wr_ref[...], preferred_element_type=jnp.float32)
             + bl_ref[...])
        ss = jnp.sum(h * h, axis=-1, keepdims=True)
        h = h * jax.lax.rsqrt(jnp.maximum(ss, 1e-24))          # == h / max(||h||, 1e-12)
        h = jnp.where(l < nl - 1, jnp.maximum(h, 0.0), h)
        hbuf_ref[nxt, pl.ds(roff, tm), :] = h.astype(jnp.bfloat16)

    # Very last step: global_add_pool (P @ h3) then Linear -> ReLU -> Linear.
    @pl.when((l == nl - 1) & (r == nr - 1) & (k == nk - 1))
    def _():
        h_fin = hbuf_ref[nxt]                                  # bf16 (npad, cp)
        pooled = jnp.dot(p_ref[...], h_fin, preferred_element_type=jnp.float32)
        z = (jnp.dot(pooled.astype(jnp.bfloat16), w1_ref[...],
                     preferred_element_type=jnp.float32) + b1_ref[...])
        z = jnp.maximum(z, 0.0)
        out_ref[...] = (jnp.dot(z.astype(jnp.bfloat16), w2_ref[...],
                                preferred_element_type=jnp.float32) + b2_ref[...])


def fused_sage_forward(x0, a, dinv, wl, bl, wr, p_mat, w1, b1, w2, b2, *, tm, tk):
    npad, cp = x0.shape
    gp = p_mat.shape[0]
    kp = w2.shape[1]
    grid = (wl.shape[0], npad // tm, npad // tk)

    def _full(shape):
        return pl.BlockSpec(shape, lambda l, r, k: (0,) * len(shape))

    return pl.pallas_call(
        _fused_sage_kernel,
        out_shape=jax.ShapeDtypeStruct((gp, kp), jnp.float32),
        grid_spec=pltpu.PrefetchScalarGridSpec(
            num_scalar_prefetch=0,
            grid=grid,
            in_specs=[
                _full((npad, cp)),                                        # x0 bf16 (resident)
                pl.BlockSpec((tm, tk), lambda l, r, k: (r, k)),           # A int8 counts
                _full((npad, 1)),                                         # deg_inv f32 (resident)
                pl.BlockSpec((None, cp, cp), lambda l, r, k: (l, 0, 0)),  # lin_l weight / layer (bf16)
                pl.BlockSpec((None, 1, cp), lambda l, r, k: (l, 0, 0)),   # lin_l bias   / layer (f32)
                pl.BlockSpec((None, cp, cp), lambda l, r, k: (l, 0, 0)),  # lin_r weight / layer (bf16)
                _full((gp, npad)),                                        # pooling matrix (bf16)
                _full((cp, cp)), _full((1, cp)),                          # MLP linear 1 (bf16 / f32)
                _full((cp, kp)), _full((1, kp)),                          # MLP linear 2 (bf16 / f32)
            ],
            out_specs=pl.BlockSpec((gp, kp), lambda l, r, k: (0, 0)),
            scratch_shapes=[
                pltpu.VMEM((tm, cp), jnp.float32),        # K-axis accumulator
                pltpu.VMEM((2, npad, cp), jnp.bfloat16),  # ping-pong activations
            ],
        ),
        compiler_params=pltpu.CompilerParams(
            dimension_semantics=("arbitrary", "arbitrary", "arbitrary"),
            vmem_limit_bytes=48 * 1024 * 1024,
        ),
    )(x0, a, dinv, wl, bl, wr, p_mat, w1, b1, w2, b2)


# ---------------------------------------------------------------------------
# Glue (plain JAX): adjacency / pooling matrices, embedding lookup, padding
# ---------------------------------------------------------------------------

def _round_up(n, m):
    return ((n + m - 1) // m) * m


def _pad2(a, rows, cols):
    return jnp.zeros((rows, cols), a.dtype).at[: a.shape[0], : a.shape[1]].set(a)


def build_count_adjacency(edge_index, num_nodes):
    """Edge-count matrix (dst x src) plus per-row f32 inverse degree.

    deg_inv[i] * (A @ x)[i] == scatter-mean of incoming messages at node i.
    Counts are clipped to 127 so they fit int8 (duplicate-edge multiplicity
    beyond 127 is not expected)."""
    src, dst = edge_index[0], edge_index[1]
    a = jnp.zeros((num_nodes, num_nodes), jnp.float32).at[dst, src].add(1.0)
    a = jnp.clip(a, 0.0, 127.0)
    deg = jnp.sum(a, axis=1, keepdims=True)
    deg_inv = jnp.where(deg > 0, 1.0 / jnp.maximum(deg, 1.0), 0.0)
    return a, deg_inv


def build_pool_matrix(batch, num_graphs):
    return (batch[None, :] == jnp.arange(num_graphs)[:, None]).astype(jnp.float32)


def init_params(key, num_node_features, hidden, num_classes):
    keys = jax.random.split(key, 16)
    k = iter(keys)

    def lin(kk, fan_in, fan_out):
        bound = 1.0 / jnp.sqrt(jnp.float32(fan_in))
        return jax.random.uniform(kk, (fan_in, fan_out), jnp.float32, -bound, bound)

    p = {}
    p["embedding"] = jax.random.normal(next(k), (num_node_features, hidden), jnp.float32)
    for name in ("conv1", "conv2", "conv3"):
        p[name] = {
            "wl": lin(next(k), hidden, hidden),                 # lin_l (aggregated), has bias
            "bl": jax.random.uniform(next(k), (1, hidden), jnp.float32, -0.1, 0.1),
            "wr": lin(next(k), hidden, hidden),                 # lin_r (root), no bias
        }
    p["mlp_w1"] = lin(next(k), hidden, hidden)
    p["mlp_b1"] = jax.random.uniform(next(k), (1, hidden), jnp.float32, -0.1, 0.1)
    p["mlp_w2"] = lin(next(k), hidden, num_classes)
    p["mlp_b2"] = jax.random.uniform(next(k), (1, num_classes), jnp.float32, -0.1, 0.1)
    return p


def sage_forward(params, x, edge_index, batch, num_graphs):
    n = x.shape[0]
    hidden = params["embedding"].shape[1]
    num_classes = params["mlp_w2"].shape[1]

    # Lane-dense padded shapes (hidden / classes -> x128, graphs -> x8).
    cp = _round_up(hidden, 128)
    kp = _round_up(num_classes, 128)
    gp = _round_up(max(num_graphs, 1), 8)

    if n <= 2048:
        # Single A tile: its block index is constant over the whole grid, so
        # the int8 adjacency stays resident in VMEM across all three layers.
        tm = tk = _round_up(n, 128)
    else:
        # Stream A tiles; wide K tile amortizes per-step overhead, small tm
        # keeps the f32 accumulator small.
        tm, tk = 512, 2048
    npad = _round_up(n, max(tm, tk))

    # Embedding path (glue): x.argmax(dim=1) then gather; bf16 for the kernel.
    idx = jnp.argmax(x, axis=1)
    x0 = _pad2(params["embedding"][idx], npad, cp).astype(jnp.bfloat16)

    # int8 edge-count adjacency + f32 per-row 1/deg (padded rows get 0).
    a_cnt, dinv = build_count_adjacency(edge_index, n)
    a = _pad2(a_cnt, npad, npad).astype(jnp.int8)
    dinv = _pad2(dinv, npad, 1)

    # global_add_pool as a matmul with a (graphs x nodes) 0/1 matrix (bf16-exact).
    p_mat = _pad2(build_pool_matrix(batch, num_graphs), gp, npad).astype(jnp.bfloat16)

    # Stack + zero-pad per-layer SAGEConv weights (bf16 weights, f32 biases).
    convs = ("conv1", "conv2", "conv3")
    wl = jnp.stack([_pad2(params[c]["wl"], cp, cp) for c in convs]).astype(jnp.bfloat16)
    bl = jnp.stack([_pad2(params[c]["bl"], 1, cp) for c in convs])
    wr = jnp.stack([_pad2(params[c]["wr"], cp, cp) for c in convs]).astype(jnp.bfloat16)

    w1 = _pad2(params["mlp_w1"], cp, cp).astype(jnp.bfloat16)
    b1 = _pad2(params["mlp_b1"], 1, cp)
    w2 = _pad2(params["mlp_w2"], cp, kp).astype(jnp.bfloat16)
    b2 = _pad2(params["mlp_b2"], 1, kp)

    out = fused_sage_forward(x0, a, dinv, wl, bl, wr, p_mat, w1, b1, w2, b2,
                             tm=tm, tk=tk)
    return out[:num_graphs, :num_classes]


# ---------------------------------------------------------------------------
# Demo
# ---------------------------------------------------------------------------

if __name__ == "__main__":
    NUM_NODE_FEATURES = 8
    HIDDEN = 16
    NUM_CLASSES = 4
    N = 12           # nodes (two graphs of 6)
    E = 30           # directed edges
    NUM_GRAPHS = 2

    key = jax.random.PRNGKey(0)
    k_x, k_e, k_p = jax.random.split(key, 3)

    # Node features (one-hot-ish categorical features, as in molecule datasets).
    x = jax.random.uniform(k_x, (N, NUM_NODE_FEATURES), jnp.float32)

    # Random edges, kept within each graph's node block (0..5 and 6..11).
    ksrc, kdst = jax.random.split(k_e)
    src_a = jax.random.randint(ksrc, (E // 2,), 0, 6)
    dst_a = jax.random.randint(kdst, (E // 2,), 0, 6)
    src_b = jax.random.randint(jax.random.fold_in(ksrc, 1), (E // 2,), 6, 12)
    dst_b = jax.random.randint(jax.random.fold_in(kdst, 1), (E // 2,), 6, 12)
    edge_index = jnp.stack(
        [jnp.concatenate([src_a, src_b]), jnp.concatenate([dst_a, dst_b])], axis=0
    ).astype(jnp.int32)

    batch = jnp.concatenate(
        [jnp.zeros((6,), jnp.int32), jnp.ones((6,), jnp.int32)]
    )

    params = init_params(k_p, NUM_NODE_FEATURES, HIDDEN, NUM_CLASSES)

    out = sage_forward(params, x, edge_index, batch, NUM_GRAPHS)
    out = jax.block_until_ready(out)
    assert out.shape == (NUM_GRAPHS, NUM_CLASSES)
    assert jnp.all(jnp.isfinite(out))
    print("KERNEL_OK")
</pallas_src>

<mosaic_0001>
module attributes {stable_mosaic.version = 11 : i64} {
  func.func @_fused_sage_kernel(%arg0: i32, %arg1: i32, %arg2: i32, %arg3: memref<128x128xbf16, #tpu.memory_space<vmem>>, %arg4: memref<128x128xi8, #tpu.memory_space<vmem>>, %arg5: memref<128x1xf32, #tpu.memory_space<vmem>>, %arg6: memref<1x128x128xbf16, #tpu.memory_space<vmem>>, %arg7: memref<1x1x128xf32, #tpu.memory_space<vmem>>, %arg8: memref<1x128x128xbf16, #tpu.memory_space<vmem>>, %arg9: memref<8x128xbf16, #tpu.memory_space<vmem>>, %arg10: memref<128x128xbf16, #tpu.memory_space<vmem>>, %arg11: memref<1x128xf32, #tpu.memory_space<vmem>>, %arg12: memref<128x128xbf16, #tpu.memory_space<vmem>>, %arg13: memref<1x128xf32, #tpu.memory_space<vmem>>, %arg14: memref<8x128xf32, #tpu.memory_space<vmem>>, %arg15: memref<128x128xf32, #tpu.memory_space<vmem>>, %arg16: memref<2x128x128xbf16, #tpu.memory_space<vmem>>) attributes {dimension_semantics = [#tpu.dimension_semantics<arbitrary>, #tpu.dimension_semantics<arbitrary>, #tpu.dimension_semantics<arbitrary>], iteration_bounds = array<i64: 3, 1, 1>, scalar_prefetch = 0 : i64, scratch_operands = 2 : i64, tpu.core_type = #tpu.core_type<tc>, window_params = [{pipeline_mode = #tpu.pipeline_mode<synchronous>, transform_indices = @transform_0, window_bounds = array<i64: 128, 128>}, {transform_indices = @transform_1, window_bounds = array<i64: 128, 128>}, {pipeline_mode = #tpu.pipeline_mode<synchronous>, transform_indices = @transform_2, window_bounds = array<i64: 128, 1>}, {transform_indices = @transform_3, window_bounds = array<i64: 1, 128, 128>}, {transform_indices = @transform_4, window_bounds = array<i64: 1, 1, 128>}, {transform_indices = @transform_5, window_bounds = array<i64: 1, 128, 128>}, {pipeline_mode = #tpu.pipeline_mode<synchronous>, transform_indices = @transform_6, window_bounds = array<i64: 8, 128>}, {pipeline_mode = #tpu.pipeline_mode<synchronous>, transform_indices = @transform_7, window_bounds = array<i64: 128, 128>}, {pipeline_mode = #tpu.pipeline_mode<synchronous>, transform_indices = @transform_8, window_bounds = array<i64: 1, 128>}, {pipeline_mode = #tpu.pipeline_mode<synchronous>, transform_indices = @transform_9, window_bounds = array<i64: 128, 128>}, {pipeline_mode = #tpu.pipeline_mode<synchronous>, transform_indices = @transform_10, window_bounds = array<i64: 1, 128>}, {pipeline_mode = #tpu.pipeline_mode<synchronous>, transform_indices = @transform_11, window_bounds = array<i64: 8, 128>}]} {
    %c2_i32 = arith.constant 2 : i32
    %c0_i32 = arith.constant 0 : i32
    %0 = arith.cmpi eq, %c2_i32, %c0_i32 : i32
    %c1_i32 = arith.constant 1 : i32
    %1 = arith.select %0, %c1_i32, %c2_i32 : i32
    %2 = arith.remsi %arg0, %1 : i32
    %c0_i32_0 = arith.constant 0 : i32
    %3 = arith.cmpi ne, %2, %c0_i32_0 : i32
    %c0_i32_1 = arith.constant 0 : i32
    %4 = arith.cmpi slt, %2, %c0_i32_1 : i32
    %c0_i32_2 = arith.constant 0 : i32
    %5 = arith.cmpi slt, %1, %c0_i32_2 : i32
    %6 = arith.xori %4, %5 : i1
    %7 = arith.andi %6, %3 : i1
    %8 = arith.addi %2, %1 : i32
    %9 = arith.select %7, %8, %2 : i32
    %c1_i32_3 = arith.constant 1 : i32
    %10 = arith.addi %arg0, %c1_i32_3 : i32
    %c2_i32_4 = arith.constant 2 : i32
    %c0_i32_5 = arith.constant 0 : i32
    %11 = arith.cmpi eq, %c2_i32_4, %c0_i32_5 : i32
    %c1_i32_6 = arith.constant 1 : i32
    %12 = arith.select %11, %c1_i32_6, %c2_i32_4 : i32
    %13 = arith.remsi %10, %12 : i32
    %c0_i32_7 = arith.constant 0 : i32
    %14 = arith.cmpi ne, %13, %c0_i32_7 : i32
    %c0_i32_8 = arith.constant 0 : i32
    %15 = arith.cmpi slt, %13, %c0_i32_8 : i32
    %c0_i32_9 = arith.constant 0 : i32
    %16 = arith.cmpi slt, %12, %c0_i32_9 : i32
    %17 = arith.xori %15, %16 : i1
    %18 = arith.andi %17, %14 : i1
    %19 = arith.addi %13, %12 : i32
    %20 = arith.select %18, %19, %13 : i32
    %c0_i32_10 = arith.constant 0 : i32
    %21 = arith.cmpi eq, %arg0, %c0_i32_10 : i32
    %c0_i32_11 = arith.constant 0 : i32
    %22 = arith.cmpi eq, %arg1, %c0_i32_11 : i32
    %23 = arith.andi %21, %22 : i1
    %c0_i32_12 = arith.constant 0 : i32
    %24 = arith.cmpi eq, %arg2, %c0_i32_12 : i32
    %25 = arith.andi %23, %24 : i1
    %26 = arith.extui %25 : i1 to i32
    %c0_i32_13 = arith.constant 0 : i32
    %27 = arith.cmpi ne, %26, %c0_i32_13 : i32
    scf.if %27 {
      %c0_28 = arith.constant 0 : index
      %c0_29 = arith.constant 0 : index
      %53 = vector.load %arg3[%c0_28, %c0_29] : memref<128x128xbf16, #tpu.memory_space<vmem>>, vector<128x128xbf16>
      %c0_30 = arith.constant 0 : index
      %c0_31 = arith.constant 0 : index
      %c0_32 = arith.constant 0 : index
      %54 = vector.load %arg16[%c0_30, %c0_31, %c0_32] : memref<2x128x128xbf16, #tpu.memory_space<vmem>>, vector<1x128x128xbf16>
      %55 = vector.shape_cast %54 : vector<1x128x128xbf16> to vector<128x128xbf16>
      %56 = vector.shape_cast %53 : vector<128x128xbf16> to vector<1x128x128xbf16>
      tpu.vector_store %arg16[%c0_30, %c0_31, %c0_32], %56 {strides = array<i32>} : memref<2x128x128xbf16, #tpu.memory_space<vmem>>, vector<1x128x128xbf16>,
      %cst_33 = arith.constant 0.000000e+00 : f32
      %57 = vector.broadcast %cst_33 : f32 to vector<8x128xf32>
      %c0_34 = arith.constant 0 : index
      %c0_35 = arith.constant 0 : index
      %58 = vector.load %arg14[%c0_34, %c0_35] : memref<8x128xf32, #tpu.memory_space<vmem>>, vector<8x128xf32>
      tpu.vector_store %arg14[%c0_34, %c0_35], %57 {strides = array<i32>} : memref<8x128xf32, #tpu.memory_space<vmem>>, vector<8x128xf32>,
    } else {
    }
    %c0_i32_14 = arith.constant 0 : i32
    %28 = arith.cmpi eq, %arg2, %c0_i32_14 : i32
    %29 = arith.extui %28 : i1 to i32
    %c0_i32_15 = arith.constant 0 : i32
    %30 = arith.cmpi ne, %29, %c0_i32_15 : i32
    scf.if %30 {
      %cst_28 = arith.constant 0.000000e+00 : f32
      %53 = vector.broadcast %cst_28 : f32 to vector<128x128xf32>
      %c0_29 = arith.constant 0 : index
      %c0_30 = arith.constant 0 : index
      %54 = vector.load %arg15[%c0_29, %c0_30] : memref<128x128xf32, #tpu.memory_space<vmem>>, vector<128x128xf32>
      tpu.vector_store %arg15[%c0_29, %c0_30], %53 {strides = array<i32>} : memref<128x128xf32, #tpu.memory_space<vmem>>, vector<128x128xf32>,
    } else {
    }
    %c128_i32 = arith.constant 128 : i32
    %31 = arith.muli %arg2, %c128_i32 : i32
    %32 = tpu.assume_multiple %31, 128 : i32
    %33 = arith.index_cast %9 : i32 to index
    %34 = arith.index_cast %32 : i32 to index
    %c0 = arith.constant 0 : index
    %35 = vector.load %arg16[%33, %34, %c0] : memref<2x128x128xbf16, #tpu.memory_space<vmem>>, vector<1x128x128xbf16>
    %36 = vector.shape_cast %35 : vector<1x128x128xbf16> to vector<128x128xbf16>
    %c0_16 = arith.constant 0 : index
    %c0_17 = arith.constant 0 : index
    %37 = vector.load %arg15[%c0_16, %c0_17] : memref<128x128xf32, #tpu.memory_space<vmem>>, vector<128x128xf32>
    %c0_18 = arith.constant 0 : index
    %c0_19 = arith.constant 0 : index
    %38 = vector.load %arg4[%c0_18, %c0_19] : memref<128x128xi8, #tpu.memory_space<vmem>>, vector<128x128xi8>
    %39 = arith.sitofp %38 : vector<128x128xi8> to vector<128x128xbf16>
    %cst = arith.constant dense<0.000000e+00> : vector<128x128xf32>
    %40 = tpu.matmul %39, %36, %cst {dimension_numbers = #tpu.dot_dimension_numbers<[1], [0], [0], [1], [0, 0, 1, 1], [], []>} : vector<128x128xbf16>, vector<128x128xbf16>, vector<128x128xf32> -> vector<128x128xf32>
    %41 = arith.addf %37, %40 : vector<128x128xf32>
    %c0_20 = arith.constant 0 : index
    %c0_21 = arith.constant 0 : index
    %42 = vector.load %arg15[%c0_20, %c0_21] : memref<128x128xf32, #tpu.memory_space<vmem>>, vector<128x128xf32>
    tpu.vector_store %arg15[%c0_20, %c0_21], %41 {strides = array<i32>} : memref<128x128xf32, #tpu.memory_space<vmem>>, vector<128x128xf32>,
    %c0_i32_22 = arith.constant 0 : i32
    %43 = arith.cmpi eq, %arg2, %c0_i32_22 : i32
    %44 = arith.extui %43 : i1 to i32
    %c0_i32_23 = arith.constant 0 : i32
    %45 = arith.cmpi ne, %44, %c0_i32_23 : i32
    scf.if %45 {
      %c128_i32_28 = arith.constant 128 : i32
      %53 = arith.muli %arg1, %c128_i32_28 : i32
      %54 = tpu.assume_multiple %53, 128 : i32
      %c0_29 = arith.constant 0 : index
      %c0_30 = arith.constant 0 : index
      %55 = vector.load %arg15[%c0_29, %c0_30] : memref<128x128xf32, #tpu.memory_space<vmem>>, vector<128x128xf32>
      %56 = arith.index_cast %54 : i32 to index
      %c0_31 = arith.constant 0 : index
      %57 = vector.load %arg5[%56, %c0_31] : memref<128x1xf32, #tpu.memory_space<vmem>>, vector<128x1xf32>
      %58 = vector.broadcast %57 : vector<128x1xf32> to vector<128x128xf32>
      %59 = arith.mulf %55, %58 : vector<128x128xf32>
      %60 = arith.index_cast %9 : i32 to index
      %61 = arith.index_cast %54 : i32 to index
      %c0_32 = arith.constant 0 : index
      %62 = vector.load %arg16[%60, %61, %c0_32] : memref<2x128x128xbf16, #tpu.memory_space<vmem>>, vector<1x128x128xbf16>
      %63 = vector.shape_cast %62 : vector<1x128x128xbf16> to vector<128x128xbf16>
      %64 = arith.truncf %59 : vector<128x128xf32> to vector<128x128xbf16>
      %c0_33 = arith.constant 0 : index
      %c0_34 = arith.constant 0 : index
      %c0_35 = arith.constant 0 : index
      %65 = vector.load %arg6[%c0_33, %c0_34, %c0_35] : memref<1x128x128xbf16, #tpu.memory_space<vmem>>, vector<1x128x128xbf16>
      %66 = vector.shape_cast %65 : vector<1x128x128xbf16> to vector<128x128xbf16>
      %cst_36 = arith.constant dense<0.000000e+00> : vector<128x128xf32>
      %67 = tpu.matmul %64, %66, %cst_36 {dimension_numbers = #tpu.dot_dimension_numbers<[1], [0], [0], [1], [0, 0, 1, 1], [], []>} : vector<128x128xbf16>, vector<128x128xbf16>, vector<128x128xf32> -> vector<128x128xf32>
      %c0_37 = arith.constant 0 : index
      %c0_38 = arith.constant 0 : index
      %c0_39 = arith.constant 0 : index
      %68 = vector.load %arg8[%c0_37, %c0_38, %c0_39] : memref<1x128x128xbf16, #tpu.memory_space<vmem>>, vector<1x128x128xbf16>
      %69 = vector.shape_cast %68 : vector<1x128x128xbf16> to vector<128x128xbf16>
      %cst_40 = arith.constant dense<0.000000e+00> : vector<128x128xf32>
      %70 = tpu.matmul %63, %69, %cst_40 {dimension_numbers = #tpu.dot_dimension_numbers<[1], [0], [0], [1], [0, 0, 1, 1], [], []>} : vector<128x128xbf16>, vector<128x128xbf16>, vector<128x128xf32> -> vector<128x128xf32>
      %71 = arith.addf %67, %70 : vector<128x128xf32>
      %c0_41 = arith.constant 0 : index
      %c0_42 = arith.constant 0 : index
      %c0_43 = arith.constant 0 : index
      %72 = vector.load %arg7[%c0_41, %c0_42, %c0_43] : memref<1x1x128xf32, #tpu.memory_space<vmem>>, vector<1x1x128xf32>
      %73 = vector.shape_cast %72 : vector<1x1x128xf32> to vector<1x128xf32>
      %74 = vector.broadcast %73 : vector<1x128xf32> to vector<128x128xf32>
      %75 = arith.addf %71, %74 : vector<128x128xf32>
      %76 = arith.mulf %75, %75 : vector<128x128xf32>
      %cst_44 = arith.constant dense<0.000000e+00> : vector<128xf32>
      %77 = vector.multi_reduction <add>, %76, %cst_44 [1] : vector<128x128xf32> to vector<128xf32>
      %78 = vector.shape_cast %77 : vector<128xf32> to vector<128x1xf32>
      %cst_45 = arith.constant 1.000000e-24 : f32
      %79 = vector.broadcast %cst_45 : f32 to vector<128x1xf32>
      %80 = arith.maximumf %78, %79 : vector<128x1xf32>
      %81 = math.rsqrt %80 : vector<128x1xf32>
      %82 = vector.broadcast %81 : vector<128x1xf32> to vector<128x128xf32>
      %83 = arith.mulf %75, %82 : vector<128x128xf32>
      %c2_i32_46 = arith.constant 2 : i32
      %84 = arith.cmpi slt, %arg0, %c2_i32_46 : i32
      %cst_47 = arith.constant 0.000000e+00 : f32
      %85 = vector.broadcast %cst_47 : f32 to vector<128x128xf32>
      %86 = arith.maximumf %83, %85 : vector<128x128xf32>
      %87 = arith.select %84, %86, %83 : vector<128x128xf32>
      %88 = arith.truncf %87 : vector<128x128xf32> to vector<128x128xbf16>
      %89 = arith.index_cast %20 : i32 to index
      %90 = arith.index_cast %54 : i32 to index
      %c0_48 = arith.constant 0 : index
      %91 = vector.load %arg16[%89, %90, %c0_48] : memref<2x128x128xbf16, #tpu.memory_space<vmem>>, vector<1x128x128xbf16>
      %92 = vector.shape_cast %91 : vector<1x128x128xbf16> to vector<128x128xbf16>
      %93 = vector.shape_cast %88 : vector<128x128xbf16> to vector<1x128x128xbf16>
      tpu.vector_store %arg16[%89, %90, %c0_48], %93 {strides = array<i32>} : memref<2x128x128xbf16, #tpu.memory_space<vmem>>, vector<1x128x128xbf16>,
    } else {
    }
    %c2_i32_24 = arith.constant 2 : i32
    %46 = arith.cmpi eq, %arg0, %c2_i32_24 : i32
    %c0_i32_25 = arith.constant 0 : i32
    %47 = arith.cmpi eq, %arg1, %c0_i32_25 : i32
    %48 = arith.andi %46, %47 : i1
    %c0_i32_26 = arith.constant 0 : i32
    %49 = arith.cmpi eq, %arg2, %c0_i32_26 : i32
    %50 = arith.andi %48, %49 : i1
    %51 = arith.extui %50 : i1 to i32
    %c0_i32_27 = arith.constant 0 : i32
    %52 = arith.cmpi ne, %51, %c0_i32_27 : i32
    scf.if %52 {
      %53 = arith.index_cast %20 : i32 to index
      %c0_28 = arith.constant 0 : index
      %c0_29 = arith.constant 0 : index
      %54 = vector.load %arg16[%53, %c0_28, %c0_29] : memref<2x128x128xbf16, #tpu.memory_space<vmem>>, vector<1x128x128xbf16>
      %55 = vector.shape_cast %54 : vector<1x128x128xbf16> to vector<128x128xbf16>
      %c0_30 = arith.constant 0 : index
      %c0_31 = arith.constant 0 : index
      %56 = vector.load %arg9[%c0_30, %c0_31] : memref<8x128xbf16, #tpu.memory_space<vmem>>, vector<8x128xbf16>
      %cst_32 = arith.constant dense<0.000000e+00> : vector<8x128xf32>
      %57 = tpu.matmul %56, %55, %cst_32 {dimension_numbers = #tpu.dot_dimension_numbers<[1], [0], [0], [1], [0, 0, 1, 1], [], []>} : vector<8x128xbf16>, vector<128x128xbf16>, vector<8x128xf32> -> vector<8x128xf32>
      %58 = arith.truncf %57 : vector<8x128xf32> to vector<8x128xbf16>
      %c0_33 = arith.constant 0 : index
      %c0_34 = arith.constant 0 : index
      %59 = vector.load %arg10[%c0_33, %c0_34] : memref<128x128xbf16, #tpu.memory_space<vmem>>, vector<128x128xbf16>
      %cst_35 = arith.constant dense<0.000000e+00> : vector<8x128xf32>
      %60 = tpu.matmul %58, %59, %cst_35 {dimension_numbers = #tpu.dot_dimension_numbers<[1], [0], [0], [1], [0, 0, 1, 1], [], []>} : vector<8x128xbf16>, vector<128x128xbf16>, vector<8x128xf32> -> vector<8x128xf32>
      %c0_36 = arith.constant 0 : index
      %c0_37 = arith.constant 0 : index
      %61 = vector.load %arg11[%c0_36, %c0_37] : memref<1x128xf32, #tpu.memory_space<vmem>>, vector<1x128xf32>
      %62 = vector.broadcast %61 : vector<1x128xf32> to vector<8x128xf32>
      %63 = arith.addf %60, %62 : vector<8x128xf32>
      %cst_38 = arith.constant 0.000000e+00 : f32
      %64 = vector.broadcast %cst_38 : f32 to vector<8x128xf32>
      %65 = arith.maximumf %63, %64 : vector<8x128xf32>
      %66 = arith.truncf %65 : vector<8x128xf32> to vector<8x128xbf16>
      %c0_39 = arith.constant 0 : index
      %c0_40 = arith.constant 0 : index
      %67 = vector.load %arg12[%c0_39, %c0_40] : memref<128x128xbf16, #tpu.memory_space<vmem>>, vector<128x128xbf16>
      %cst_41 = arith.constant dense<0.000000e+00> : vector<8x128xf32>
      %68 = tpu.matmul %66, %67, %cst_41 {dimension_numbers = #tpu.dot_dimension_numbers<[1], [0], [0], [1], [0, 0, 1, 1], [], []>} : vector<8x128xbf16>, vector<128x128xbf16>, vector<8x128xf32> -> vector<8x128xf32>
      %c0_42 = arith.constant 0 : index
      %c0_43 = arith.constant 0 : index
      %69 = vector.load %arg13[%c0_42, %c0_43] : memref<1x128xf32, #tpu.memory_space<vmem>>, vector<1x128xf32>
      %70 = vector.broadcast %69 : vector<1x128xf32> to vector<8x128xf32>
      %71 = arith.addf %68, %70 : vector<8x128xf32>
      %c0_44 = arith.constant 0 : index
      %c0_45 = arith.constant 0 : index
      %72 = vector.load %arg14[%c0_44, %c0_45] : memref<8x128xf32, #tpu.memory_space<vmem>>, vector<8x128xf32>
      tpu.vector_store %arg14[%c0_44, %c0_45], %71 {strides = array<i32>} : memref<8x128xf32, #tpu.memory_space<vmem>>, vector<8x128xf32>,
    } else {
    }
    return
  }
  func.func @transform_0(%arg0: i32, %arg1: i32, %arg2: i32) -> (i32, i32) {
    %c0_i32 = arith.constant 0 : i32
    %c0_i32_0 = arith.constant 0 : i32
    %c0_i32_1 = arith.constant 0 : i32
    return %c0_i32, %c0_i32_0 : i32, i32
  }
  func.func @transform_1(%arg0: i32, %arg1: i32, %arg2: i32) -> (i32, i32) {
    %c0_i32 = arith.constant 0 : i32
    return %arg1, %arg2 : i32, i32
  }
  func.func @transform_2(%arg0: i32, %arg1: i32, %arg2: i32) -> (i32, i32) {
    %c0_i32 = arith.constant 0 : i32
    %c0_i32_0 = arith.constant 0 : i32
    %c0_i32_1 = arith.constant 0 : i32
    return %c0_i32, %c0_i32_0 : i32, i32
  }
  func.func @transform_3(%arg0: i32, %arg1: i32, %arg2: i32) -> (i32, i32, i32) {
    %c0_i32 = arith.constant 0 : i32
    %c0_i32_0 = arith.constant 0 : i32
    %c0_i32_1 = arith.constant 0 : i32
    return %arg0, %c0_i32, %c0_i32_0 : i32, i32, i32
  }
  func.func @transform_4(%arg0: i32, %arg1: i32, %arg2: i32) -> (i32, i32, i32) {
    %c0_i32 = arith.constant 0 : i32
    %c0_i32_0 = arith.constant 0 : i32
    %c0_i32_1 = arith.constant 0 : i32
    return %arg0, %c0_i32, %c0_i32_0 : i32, i32, i32
  }
  func.func @transform_5(%arg0: i32, %arg1: i32, %arg2: i32) -> (i32, i32, i32) {
    %c0_i32 = arith.constant 0 : i32
    %c0_i32_0 = arith.constant 0 : i32
    %c0_i32_1 = arith.constant 0 : i32
    return %arg0, %c0_i32, %c0_i32_0 : i32, i32, i32
  }
  func.func @transform_6(%arg0: i32, %arg1: i32, %arg2: i32) -> (i32, i32) {
    %c0_i32 = arith.constant 0 : i32
    %c0_i32_0 = arith.constant 0 : i32
    %c0_i32_1 = arith.constant 0 : i32
    return %c0_i32, %c0_i32_0 : i32, i32
  }
  func.func @transform_7(%arg0: i32, %arg1: i32, %arg2: i32) -> (i32, i32) {
    %c0_i32 = arith.constant 0 : i32
    %c0_i32_0 = arith.constant 0 : i32
    %c0_i32_1 = arith.constant 0 : i32
    return %c0_i32, %c0_i32_0 : i32, i32
  }
  func.func @transform_8(%arg0: i32, %arg1: i32, %arg2: i32) -> (i32, i32) {
    %c0_i32 = arith.constant 0 : i32
    %c0_i32_0 = arith.constant 0 : i32
    %c0_i32_1 = arith.constant 0 : i32
    return %c0_i32, %c0_i32_0 : i32, i32
  }
  func.func @transform_9(%arg0: i32, %arg1: i32, %arg2: i32) -> (i32, i32) {
    %c0_i32 = arith.constant 0 : i32
    %c0_i32_0 = arith.constant 0 : i32
    %c0_i32_1 = arith.constant 0 : i32
    return %c0_i32, %c0_i32_0 : i32, i32
  }
  func.func @transform_10(%arg0: i32, %arg1: i32, %arg2: i32) -> (i32, i32) {
    %c0_i32 = arith.constant 0 : i32
    %c0_i32_0 = arith.constant 0 : i32
    %c0_i32_1 = arith.constant 0 : i32
    return %c0_i32, %c0_i32_0 : i32, i32
  }
  func.func @transform_11(%arg0: i32, %arg1: i32, %arg2: i32) -> (i32, i32) {
    %c0_i32 = arith.constant 0 : i32
    %c0_i32_0 = arith.constant 0 : i32
    %c0_i32_1 = arith.constant 0 : i32
    return %c0_i32, %c0_i32_0 : i32, i32
  }
}

</mosaic_0001>

<bundles_post_ra>
// kernel: tpu_custom_call.1
= control target key start
LH: loop header
LB: loop body
LE: loop exit
PB: predicated region body
PF: predicated region fallthrough
CT: control target
= control target key end

     0   :  { %s3347_s0 = inlined_call_operand.vmem [shape: bf16[128,128], index: 0, kind: input, shape index: {}]   ;;  %s3348_s1 = inlined_call_operand.hbm [shape: s8[128,128], index: 1, kind: input, shape index: {}]   ;;  %s3349_s2 = inlined_call_operand.vmem [shape: f32[128,1], index: 2, kind: input, shape index: {}]   ;;  %s3350_s3 = inlined_call_operand.hbm [shape: bf16[3,128,128], index: 3, kind: input, shape index: {}]   ;;  %s3351_s4 = inlined_call_operand.vmem [shape: f32[3,1,128], index: 4, kind: input, shape index: {}]   ;;  %s3352_s5 = inlined_call_operand.hbm [shape: bf16[3,128,128], index: 5, kind: input, shape index: {}]   ;;  %s3353_s6 = inlined_call_operand.vmem [shape: bf16[8,128], index: 6, kind: input, shape index: {}]   ;;  %s3354_s7 = inlined_call_operand.vmem [shape: bf16[128,128], index: 7, kind: input, shape index: {}]   ;;  %s3355_s8 = inlined_call_operand.vmem [shape: f32[1,128], index: 8, kind: input, shape index: {}]   ;;  %s3356_s9 = inlined_call_operand.hbm [shape: bf16[128,128], index: 9, kind: input, shape index: {}]   ;;  %s3357_s10 = inlined_call_operand.vmem [shape: f32[1,128], index: 10, kind: input, shape index: {}]   ;;  %s3358_s11 = inlined_call_operand.hbm [shape: f32[8,128], index: 11, kind: output, shape index: {}]  }
   0x1   :  { %3372 = sst [smem:[#allocation22_spill]] %s3350_s3 }
   0x2   :  { %3373 = sst [smem:[#allocation23_spill]] %s3355_s8 }
   0x3   :  { %3374 = sst [smem:[#allocation24_spill]] %s3357_s10 }
   0x4   :  { %3375 = sst [smem:[#allocation25_spill]] %s3358_s11 }
   0x5   :  { %16 = vsyncpa [#allocation5], 0 }
   0x6   :  { %17 = vsyncpa [#allocation8], 0 }
   0x7   :  { %19 = vsyncpa [#allocation8 + $0x1], 0 }
   0x8   :  { %20 = vsyncpa [#allocation11], 0 }
   0x9   :  { %21 = vsyncpa [#allocation6], 0  ;;  %s2682_s17 = smov 0   ;;  %s2684_s18 = smov 0  }
   0xa   :  { %s2686_s19 = smov 0   ;;  %s2688_s20 = smov 0  }
   0xb   :  { %s2690_s21 = smov 0   ;;  %s2692_s22 = smov 0  }
   0xc LB: > { %3376 = sst [smem:[#allocation17_spill]] %s2595_s19  ;;  %s46_s23 = sadd.s32 1, %s2603_s21  ;;  %s2607_s22 = sphi %s2692_s22, %s27_s22   ;;  %s2603_s21 = sphi %s2690_s21, %s3406_s21   ;;  %s2599_s20 = sphi %s2688_s20, %s3405_s20   ;;  %s2595_s19 = sphi %s2686_s19, %s3404_s19   ;;  %s2591_s18 = sphi %s2684_s18, %s3408_s18   ;;  %s2587_s17 = sphi %s2682_s17, %s3407_s17  }
   0xd   : > { %3377 = sst [smem:[#allocation18_spill]] %s2603_s21  ;;  %s123_s24 = sadd.s32 1, %s2595_s19 }
   0xe   : > { %3378 = sst [smem:[#allocation19_spill]] %s2607_s22  ;;  %p48_p0 = scmp.ge.s32.totalorder %s46_s23, 3 }
   0xf   : > { %p130_p1 = scmp.ne.s32.totalorder %s2595_s19, %s2591_s18  ;;  %p131_p2 = scmp.eq.s32.totalorder %s2607_s22, 0 }
  0x10   : > { %s3410_s23 = smov (%p48_p0, %s46_s23), 0  ;;  %p2265_p5 = scmp.lt.s32.totalorder %s2607_s22, 3 }
  0x11   : > { %3379 = sst [smem:[#allocation20_spill]] %s3410_s23  ;;  %p2719_p3 = por %p131_p2, %p130_p1 }
  0x12   : > { %s120_s26 = ssub.s32 %s2603_s21, %s3410_s23  ;;  %s386_s27 = sand.u32 1, %s2607_s22  }
  0x13   : > { %p121_p4 = scmp.eq.s32.totalorder %s120_s26, 0  ;;  %s388_s28 = sand.u32 1, %s2595_s19  }
  0x14   : > { %s2731_s30 = sshll.u32 %s388_s28, 6  ;;  %s3359_s12 = sshll.u32 %s2603_s21, 10 }
  0x15   : > { %s2729_s29 = scalar_select %p121_p4, %s2595_s19, %s123_s24  }
  0x16   : > { %s3382_s3 = sld [smem:[#allocation22_spill]]  ;;  %s390_s16 = scalar_lea.vmem [#allocation7], %s2731_s30 }
  0x17   : > { %3381 = sst [smem:[#allocation21_spill]] %s2729_s29  ;;  %s397_s26 = sshll.u32 %s390_s16, 4  ;;  %s2742_s26 = int_to_ptr.vmem [resolvable:$true] %s397_s26 }
  0x18   : > { %p2746_p6 = pnand %p2265_p5, %p2719_p3  ;;  %s2750_s28 = scalar_lea.sflag [#allocation8], %s386_s27 }
  0x1a   : > { %p3369_p8 = pneg %p2746_p6 }
  0x1c   : > { %s2739_s15 = scalar_lea.hbm %s3382_s3, %s3359_s12  ;;  %s2408_s25 = scalar_lea.hbm %s3382_s3, 3072 }
  0x1d   : > { %s2403_s13 = scalar_lea.hbm %s2739_s15, 1024  ;;  %p2409_p11 = scmp.lt.u32.totalorder %s2739_s15, %s3382_s3 }
  0x1e   : > { %p2404_p7 = scmp.ne.s32.totalorder %s2739_s15, %s2403_s13  ;;  %p2410_p12 = scmp.lt.u32.totalorder %s2408_s25, %s2403_s13 }
  0x1f   : > { %p2412_p0 = scmp.lt.u32.totalorder %s2403_s13, %s2739_s15 }
  0x20   : > { %p2406_p9 = pnand %p3369_p8, %p2404_p7  ;;  %p2411_p13 = por %p2410_p12, %p2409_p11 }
  0x22   : > { %p2407_p10 = pneg %p2406_p9  ;;  %p2413_p1 = por %p2412_p0, %p2411_p13 }
  0x24   : > { %p2414_p2 = pnand %p2413_p1, %p2407_p10 }
  0x26   : > { %2417 = shalt.err (!%p2414_p2)
}
  0x27   : > { %s2418_s27 = scalar_lea.vmem %s2742_s26, 1024  ;;  %s2609_s14 = smov [#allocation7]  }
  0x28   : > { %p2419_p3 = scmp.ne.s32.totalorder %s2742_s26, %s2418_s27  ;;  %s2423_s16 = sshll.u32 %s2609_s14, 4  ;;  %s2424_s16 = int_to_ptr.vmem [resolvable:$false] %s2423_s16 }
  0x29   : > { %s2425_s23 = scalar_lea.vmem %s2424_s16, 2048  ;;  %p2426_p7 = scmp.lt.s32.totalorder %s2742_s26, %s2424_s16 }
  0x2a   : > { %p2421_p4 = pnand %p2419_p3, %p3369_p8  ;;  %p2427_p9 = scmp.lt.s32.totalorder %s2425_s23, %s2418_s27 }
  0x2c   : > { %p2422_p5 = pneg %p2421_p4  ;;  %p2428_p11 = por %p2427_p9, %p2426_p7 }
  0x2e   : > { %p2429_p12 = pnand %p2428_p11, %p2422_p5 }
  0x30   : > { %2432 = shalt.err (!%p2429_p12)
}
  0x31   : > { %s3361_s12 = smov 64   ;;  %s3363_s13 = smov 4  }
  0x32   : > { %2259 = dma.hbm_to_vmem [thread:$0]  (!%p2746_p6), %s2739_s15, 1024, %s2742_s26, %s2750_s28, %s3361_s12, %s3361_s12, %s3363_s13  }
  0x33   : > { %s417_s25 = scalar_lea.vmem [#allocation9], %s2731_s30  ;;  %s2783_s14 = sadd.s32 4294967295, %s2607_s22  }
  0x34   : > { %s424_s27 = sshll.u32 %s417_s25, 4  ;;  %p136_p10 = scmp.ne.s32.totalorder %s2591_s18, %s2587_s17  ;;  %s2819_s27 = int_to_ptr.vmem [resolvable:$true] %s424_s27 }
  0x35   : > { %p3368_p13 = scmp.eq.s32.totalorder %s2783_s14, 0  ;;  %p1881_p0 = scmp.ge.s32.totalorder %s2607_s22, 1 }
  0x36   : > { %p325_p1 = scmp.lt.s32.totalorder %s2607_s22, 4  ;;  %s2612_s30 = smov [#allocation4]  }
  0x37   : > { %p2792_p2 = por %p3368_p13, %p136_p10  ;;  %s344_s15 = sshll.u32 %s2612_s30, 4  ;;  %s2802_s15 = int_to_ptr.vmem [resolvable:$true] %s344_s15 }
  0x38   : > { %p2796_p3 = pnand %p1881_p0, %p325_p1  ;;  %s2613_s26 = smov [#allocation10]  }
  0x39   : > { %s3384_s16 = scalar_select %p2792_p2, 1, 0 }
  0x3a   : > { %p2249_p4 = pneg %p2796_p3  ;;  %s369_s25 = sshll.u32 %s2613_s26, 4  ;;  %s2817_s25 = int_to_ptr.vmem [resolvable:$true] %s369_s25 }
  0x3b   : > { %s3387_s12 = sshll.u32 %s2603_s21, 10  ;;  %s2433_s22 = scalar_lea.hbm %s3348_s1, 512 }
  0x3c   : > { %p2806_p5 = pnand %p2249_p4, %p3368_p13  ;;  %s2815_s29 = scalar_lea.hbm %s3352_s5, %s3387_s12 }
  0x3d   : > { %p2434_p7 = scmp.ne.s32.totalorder %s3348_s1, %s2433_s22  ;;  %p2440_p10 = scmp.lt.u32.totalorder %s2433_s22, %s3348_s1 }
  0x3e   : > { %p2435_p9 = pneg %p2806_p5 }
  0x40   : > { %p2436_p11 = pnand %p2435_p9, %p2434_p7 }
  0x42   : > { %p2437_p12 = pneg %p2436_p11 }
  0x44   : > { %p2442_p0 = pnand %p2440_p10, %p2437_p12 }
  0x46   : > { %2445 = shalt.err (!%p2442_p0)
}
  0x47   : > { %s2446_s19 = scalar_lea.vmem %s2802_s15, 512  ;;  %p2454_p8 = scmp.lt.s32.totalorder %s2802_s15, %s2802_s15 }
  0x48   : > { %p2447_p1 = scmp.ne.s32.totalorder %s2802_s15, %s2446_s19  ;;  %p2455_p7 = scmp.lt.s32.totalorder %s2446_s19, %s2446_s19 }
  0x4a   : > { %p2449_p4 = pnand %p2447_p1, %p2435_p9  ;;  %p2456_p11 = por %p2455_p7, %p2454_p8 }
  0x4c   : > { %p2450_p13 = pneg %p2449_p4 }
  0x4e   : > { %p2457_p2 = pnand %p2456_p11, %p2450_p13 }
  0x50   : > { %2460 = shalt.err (!%p2457_p2)
}
  0x51   : > { %s2614_s10 = smov 128   ;;  %s2615_s11 = smov 8  }
  0x52   : > { %2252 = dma.hbm_to_vmem [thread:$0]  (!%p2806_p5), %s3348_s1, 512, %s2802_s15, [#allocation5], %s2614_s10, %s2614_s10, %s2615_s11  }
  0x53   : > { %s2461_s3 = scalar_lea.hbm %s3356_s9, 1024 }
  0x54   : > { %p2462_p8 = scmp.ne.s32.totalorder %s3356_s9, %s2461_s3  ;;  %p2468_p12 = scmp.lt.u32.totalorder %s2461_s3, %s3356_s9 }
  0x56   : > { %p2464_p13 = pnand %p2462_p8, %p2435_p9 }
  0x58   : > { %p2465_p2 = pneg %p2464_p13 }
  0x5a   : > { %p2470_p10 = pnand %p2468_p12, %p2465_p2 }
  0x5c   : > { %2473 = shalt.err (!%p2470_p10)
}
  0x5d   : > { %s2474_s15 = scalar_lea.vmem %s2817_s25, 1024  ;;  %p2482_p7 = scmp.lt.s32.totalorder %s2817_s25, %s2817_s25 }
  0x5e   : > { %p2475_p0 = scmp.ne.s32.totalorder %s2817_s25, %s2474_s15  ;;  %p2483_p11 = scmp.lt.s32.totalorder %s2474_s15, %s2474_s15 }
  0x60   : > { %p2477_p1 = pnand %p2475_p0, %p2435_p9  ;;  %p2484_p8 = por %p2483_p11, %p2482_p7 }
  0x62   : > { %p2478_p4 = pneg %p2477_p1 }
  0x64   : > { %p2485_p13 = pnand %p2484_p8, %p2478_p4 }
  0x66   : > { %2488 = shalt.err (!%p2485_p13)
}
  0x67   : > { %s3388_s8 = smov 4   ;;  %s3389_s21 = smov 64  }
  0x68   : > { %2255 = dma.hbm_to_vmem [thread:$0]  (!%p2806_p5), %s3356_s9, 1024, %s2817_s25, [#allocation11], %s3389_s21, %s3389_s21, %s3388_s8  }
  0x69   : > { %s2489_s22 = scalar_lea.hbm %s2815_s29, 1024  ;;  %p3390_p2 = pneg %p2746_p6 }
  0x6a   : > { %p2490_p9 = scmp.ne.s32.totalorder %s2815_s29, %s2489_s22  ;;  %s2494_s26 = scalar_lea.hbm %s3352_s5, 3072 }
  0x6b   : > { %p2495_p0 = scmp.lt.u32.totalorder %s2815_s29, %s3352_s5  ;;  %p2496_p1 = scmp.lt.u32.totalorder %s2494_s26, %s2489_s22 }
  0x6c   : > { %p2492_p12 = pnand %p2490_p9, %p3390_p2  ;;  %p2498_p7 = scmp.lt.u32.totalorder %s2489_s22, %s2815_s29 }
  0x6d   : > { %p2497_p4 = por %p2496_p1, %p2495_p0 }
  0x6e   : > { %p2493_p10 = pneg %p2492_p12 }
  0x6f   : > { %p2499_p11 = por %p2498_p7, %p2497_p4 }
  0x71   : > { %p2500_p8 = pnand %p2499_p11, %p2493_p10 }
  0x73   : > { %2503 = shalt.err (!%p2500_p8)
}
  0x74   : > { %s2504_s25 = scalar_lea.vmem %s2819_s27, 1024  ;;  %p3391_p13 = pmov %p3390_p2 }
  0x75   : > { %p2505_p5 = scmp.ne.s32.totalorder %s2819_s27, %s2504_s25  ;;  %s2616_s12 = smov [#allocation9]  }
  0x76   : > { %s2509_s19 = sshll.u32 %s2616_s12, 4  ;;  %s2510_s19 = int_to_ptr.vmem [resolvable:$false] %s2509_s19 }
  0x77   : > { %p2507_p9 = pnand %p2505_p5, %p3391_p13  ;;  %s2511_s15 = scalar_lea.vmem %s2510_s19, 2048 }
  0x78   : > { %p2512_p12 = scmp.lt.s32.totalorder %s2819_s27, %s2510_s19  ;;  %p2513_p0 = scmp.lt.s32.totalorder %s2511_s15, %s2504_s25 }
  0x79   : > { %p2508_p2 = pneg %p2507_p9 }
  0x7a   : > { %p2514_p1 = por %p2513_p0, %p2512_p12 }
  0x7c   : > { %p2515_p4 = pnand %p2514_p1, %p2508_p2 }
  0x7e   : > { %2518 = shalt.err (!%p2515_p4)
}
  0x7f   : > { %2262 = dma.hbm_to_vmem [thread:$0]  (!%p2746_p6), %s2815_s29, 1024, %s2819_s27, %s2750_s28, %s3389_s21, %s3389_s21, %s3388_s8  }
  0x80   : > { %436 = sbr.rel (%p2796_p3) target bundleno = 1534 (0x5fe), region = 64  ;;  %p3392_p10 = scmp.eq.s32.totalorder (!%p2796_p3), %s2783_s14, 0 }
  0x87   : > { %2570 = dma.done.wait (%p3392_p10), [#allocation5], 512   ;;  %p3393_p7 = pmov %p3392_p10 }
  0x88   : > { %s442_s24 = sand.u32 1, %s2783_s14   ;;  %s444_s10 = sand.u32 1, %s2591_s18  }
  0x89   : > { %2572 = vsyncadd (%p3393_p7), [#allocation5], 4294966784  ;;  %s1893_s11 = sshll.u32 %s444_s10, 6  ;;  %s443_s22 = scalar_lea.sflag [#allocation8], %s442_s24 }
  0x8a   : > { %s2911_s17 = scalar_lea.vmem [#allocation7], %s1893_s11  ;;  %p3394_p11 = scmp.ne.s32.totalorder %s3384_s16, 0 }
  0x8c   : > { %2574 = dma.done.wait (%p3394_p11), %s443_s22, 2048  }
  0x8d   : > { %2576 = vsyncadd (%p3394_p11), %s443_s22, 4294965248  ;;  %s2917_s29 = scalar_lea.vmem [#allocation9], %s1893_s11  ;;  %p3395_p6 = pmov %p3393_p7 }
  0x8f   : > { %2578 = dma.done.wait (%p3395_p6), [#allocation11], 1024   ;;  %p3396_p3 = pmov %p3395_p6 }
  0x90   : > { %p502_p8 = scmp.lt.s32.totalorder %s2599_s20, 2  ;;  %p506_p5 = scmp.lt.s32.totalorder %s2599_s20, 0 }
  0x91   : > { %2580 = vsyncadd (%p3396_p3), [#allocation11], 4294966272  ;;  %s507_s28 = ssub.s32 0, %s2599_s20  ;;  %s518_s27 = sadd.s32 1, %s2599_s20 }
  0x92   : > { %s2930_s16 = scalar_select %p502_p8, %s2599_s20, 2 }
  0x93   : > { %s1896_s23 = smin.u32 %s2599_s20, %s507_s28  ;;  %p519_p13 = scmp.lt.s32.totalorder %s518_s27, 0 }
  0x94   : > { %s504_s13 = scalar_lea.vmem %s3351_s4, %s2930_s16  ;;  %s509_s26 = sand.u32 1, %s1896_s23  }
  0x95   : > { %s510_s30 = ssub.s32 0, %s509_s26  ;;  %s520_s3 = ssub.s32 0, %s518_s27 }
  0x96   : > { %s3412_s30 = smov (!%p506_p5, %s510_s30), %s509_s26  ;;  %s1899_s25 = smin.u32 %s520_s3, %s518_s27 }
  0x97   : > { %p531_p9 = scmp.eq.s32.totalorder %s2599_s20, 0  ;;  %p1898_p2 = scmp.lt.s32.totalorder %s3412_s30, 0 }
  0x98   : > { %s516_s12 = sadd.s32 2, %s3412_s30  ;;  %s522_s19 = sand.u32 1, %s1899_s25   ;;  %v2329_v0 = vld [vmem:[%s3347_s0] sm:$0xff] (%p531_p9)   ;;  %v2330_v1 = vld [vmem:[%s3347_s0 + $0x8] sm:$0xff] (%p531_p9)   ;;  %v2617_v2 = vmov (%p531_p9), 0.0   ;;  %v2331_v3 = vld [vmem:[%s3347_s0 + $0x10] sm:$0xff] (%p531_p9)  }
  0x99   : > { %s3414_s12 = smov (!%p1898_p2, %s516_s12), %s3412_s30  ;;  %s523_s15 = ssub.s32 0, %s522_s19  ;;  %612 = vst [vmem:[#allocation12] sm:$0xff] (%p531_p9), %v2617_v2  ;;  %604 = vst [vmem:[#allocation3] sm:$0xff] (%p531_p9), %v2329_v0  ;;  %v2332_v4 = vld [vmem:[%s3347_s0 + $0x18] sm:$0xff] (%p531_p9)   ;;  %v2333_v5 = vld [vmem:[%s3347_s0 + $0x20] sm:$0xff] (%p531_p9)  }
  0x9a   : > { %s3416_s15 = smov (!%p519_p13, %s523_s15), %s522_s19  ;;  %539 = sbr.rel (!%p531_p9) target bundleno = 161 (0xa1), region = 84 }
  0x9b   : > { %p1901_p12 = scmp.lt.s32.totalorder %s3416_s15, 0  ;;  %s529_s24 = sadd.s32 2, %s3416_s15  ;;  %605 = vst [vmem:[#allocation3 + $0x8] sm:$0xff] (%p531_p9), %v2330_v1  ;;  %606 = vst [vmem:[#allocation3 + $0x10] sm:$0xff] (%p531_p9), %v2331_v3  ;;  %v2334_v6 = vld [vmem:[%s3347_s0 + $0x28] sm:$0xff] (%p531_p9)   ;;  %v2335_v7 = vld [vmem:[%s3347_s0 + $0x30] sm:$0xff] (%p531_p9)  }
  0x9c   : > { %607 = vst [vmem:[#allocation3 + $0x18] sm:$0xff] (%p531_p9), %v2332_v4  ;;  %608 = vst [vmem:[#allocation3 + $0x20] sm:$0xff] (%p531_p9), %v2333_v5  ;;  %v2336_v8 = vld [vmem:[%s3347_s0 + $0x38] sm:$0xff] (%p531_p9)  }
  0x9d   : > { %s3418_s24 = smov (!%p1901_p12, %s529_s24), %s3416_s15  ;;  %609 = vst [vmem:[#allocation3 + $0x28] sm:$0xff] (%p531_p9), %v2334_v6  ;;  %610 = vst [vmem:[#allocation3 + $0x30] sm:$0xff] (%p531_p9), %v2335_v7 }
  0x9e   : > { %611 = vst [vmem:[#allocation3 + $0x38] sm:$0xff] (%p531_p9), %v2336_v8 }
  0xa1 PF: > { %s1964_s22 = sshll.u32 %s3414_s12, 6  ;;  %v2967_v9 = vld [vmem:[#allocation4] sm:$0xff]  ;;  %v2618_v11 = vmov 0   ;;  %v827_v12 = vld [vmem:[%s3349_s2 + $0x10] sm:$0xff]  ;;  %v828_v16 = vld [vmem:[%s3349_s2 + $0x18] sm:$0xff]  ;;  %p1455_p0 = scmp.eq.s32.totalorder %s2599_s20, 2 }
  0xa2   : > { %v667_v10 = vunpack.c.l.s8.bf16 %v2967_v9  ;;  %2338 = vset.pattern.permute.xlu1 %v2618_v11  ;;  %2337 = vset.pattern.permute.xlu0 %v2618_v11  ;;  %v825_v13 = vld [vmem:[%s3349_s2] sm:$0xff]  ;;  %s2976_s21 = scalar_lea.vmem [#allocation3], %s1964_s22  ;;  %v826_v17 = vld [vmem:[%s3349_s2 + $0x8] sm:$0xff]  ;;  %v836_v22 = vld [vmem:[%s3349_s2 + $0x58] sm:$0xff]  ;;  %v668_v45 = vunpack.c.h.s8.bf16 %v2967_v9  ;;  %vm2620_vm1 = vmmov (%p1455_p0), 0   ;;  %s3400_s12 = sld [smem:[#allocation24_spill]] (%p1455_p0) }
  0xa3   : > { %853 = vperm.xlu1 %2338, %v827_v12   ;;  %843 = vperm.xlu0 %2337, %v825_v13   ;;  %v834_v19 = vld [vmem:[%s3349_s2 + $0x48] sm:$0xff]  ;;  %v833_v20 = vld [vmem:[%s3349_s2 + $0x40] sm:$0xff]  ;;  %v835_v23 = vld [vmem:[%s3349_s2 + $0x50] sm:$0xff]  ;;  %s1416_s16 = scalar_select %p502_p8, 1, 0 }
  0xa4   : > { %2061 = vmatprep.mubr.bf16.mxu0 %v667_v10  ;;  %v2339_v24 = vld [vmem:[%s2917_s29] sm:$0xff]   ;;  %v2340_v25 = vld [vmem:[%s2917_s29 + $0x8] sm:$0xff]   ;;  %v2341_v29 = vld [vmem:[%s2917_s29 + $0x10] sm:$0xff]  }
  0xa5   : > { %v639_v14 = vld [vmem:[%s2976_s21] sm:$0xff]  ;;  %v2980_v15 = vld [vmem:[%s2976_s21 + $0x8] sm:$0xff]  ;;  %v2990_v18 = vld [vmem:[%s2976_s21 + $0x10] sm:$0xff]  ;;  %2077 = vmatprep.subr.bf16.mxu1 %v2339_v24 }
  0xa6   : > { %2045 = vmatprep.subr.bf16.mxu0 %v639_v14  ;;  %2093 = vmatprep.mubr.bf16.mxu1 %v639_v14  ;;  %v3000_v21 = vld [vmem:[%s2976_s21 + $0x18] sm:$0xff]  ;;  %v3013_v26 = vld [vmem:[%s2976_s21 + $0x20] sm:$0xff]  ;;  %v830_v27 = vld [vmem:[%s3349_s2 + $0x28] sm:$0xff] }
  0xa7   : > { %2046 = vmatpush3.bf16.msra.mxu0 %v639_v14  ;;  %858 = vperm.xlu1 %2338, %v828_v16   ;;  %v829_v28 = vld [vmem:[%s3349_s2 + $0x20] sm:$0xff]  ;;  %v3025_v30 = vld [vmem:[%s2976_s21 + $0x28] sm:$0xff]  ;;  %v832_v31 = vld [vmem:[%s3349_s2 + $0x38] sm:$0xff] }
  0xa8   : > { %2047 = vmatprep.subr.bf16.mxu0 %v2980_v15  ;;  %848 = vperm.xlu0 %2337, %v826_v17   ;;  %v831_v32 = vld [vmem:[%s3349_s2 + $0x30] sm:$0xff]  ;;  %v2342_v33 = vld [vmem:[%s2917_s29 + $0x18] sm:$0xff]   ;;  %v838_v35 = vld [vmem:[%s3349_s2 + $0x68] sm:$0xff] }
  0xa9   : > { %2078 = vmatpush3.bf16.msra.mxu1 %v2339_v24  ;;  %v3037_v34 = vld [vmem:[%s2976_s21 + $0x30] sm:$0xff]  ;;  %v837_v36 = vld [vmem:[%s3349_s2 + $0x60] sm:$0xff]  ;;  %v3050_v38 = vld [vmem:[%s2976_s21 + $0x38] sm:$0xff] }
  0xaa   : > { %2079 = vmatprep.subr.bf16.mxu1 %v2340_v25  ;;  %v2344_v37 = vld [vmem:[%s2917_s29 + $0x20] sm:$0xff]   ;;  %v840_v39 = vld [vmem:[%s3349_s2 + $0x78] sm:$0xff]  ;;  %v839_v40 = vld [vmem:[%s3349_s2 + $0x70] sm:$0xff] }
  0xab   : > { %2048 = vmatpush3.bf16.msra.mxu0 %v2980_v15  ;;  %888 = vperm.xlu1 %2338, %v834_v19   ;;  %v2346_v41 = vld [vmem:[%s2917_s29 + $0x28] sm:$0xff]   ;;  %v2343_v43 = vld [vmem:[%s2911_s17] sm:$0xff]   ;;  %v2348_v44 = vld [vmem:[%s2917_s29 + $0x30] sm:$0xff]  }
  0xac   : > { %2049 = vmatprep.subr.bf16.mxu0 %v2990_v18  ;;  %883 = vperm.xlu0 %2337, %v833_v20   ;;  %v664_v42 = vld [vmem:[#allocation4 + $0x8] sm:$0xff]  ;;  %v2350_v48 = vld [vmem:[%s2917_s29 + $0x38] sm:$0xff]   ;;  %v665_v49 = vld [vmem:[#allocation4 + $0x10] sm:$0xff] }
  0xad   : > { %2080 = vmatpush3.bf16.msra.mxu1 %v2340_v25  ;;  %v669_v46 = vunpack.c.l.s8.bf16 %v664_v42  ;;  %v2345_v47 = vld [vmem:[%s2911_s17 + $0x8] sm:$0xff]   ;;  %v2347_v50 = vld [vmem:[%s2911_s17 + $0x10] sm:$0xff]   ;;  %v670_v51 = vunpack.c.h.s8.bf16 %v664_v42  ;;  %v671_v52 = vunpack.c.l.s8.bf16 %v665_v49  ;;  %v2349_v53 = vld [vmem:[%s2911_s17 + $0x18] sm:$0xff]   ;;  %v672_v56 = vunpack.c.h.s8.bf16 %v665_v49 }
  0xae   : > { %2081 = vmatprep.subr.bf16.mxu1 %v2341_v29  ;;  %v666_v54 = vld [vmem:[#allocation4 + $0x18] sm:$0xff]  ;;  %v2351_v55 = vld [vmem:[%s2911_s17 + $0x20] sm:$0xff]   ;;  %v2352_v58 = vld [vmem:[%s2911_s17 + $0x28] sm:$0xff]  }
  0xaf   : > { %2050 = vmatpush3.bf16.msra.mxu0 %v2990_v18  ;;  %898 = vperm.xlu1 %2338, %v836_v22   ;;  %v673_v57 = vunpack.c.l.s8.bf16 %v666_v54  ;;  %v674_v59 = vunpack.c.h.s8.bf16 %v666_v54  ;;  %v2353_v60 = vld [vmem:[%s2911_s17 + $0x30] sm:$0xff]   ;;  %v2354_v61 = vld [vmem:[%s2911_s17 + $0x38] sm:$0xff]  }
  0xb0   : > { %2051 = vmatprep.subr.bf16.mxu0 %v3000_v21  ;;  %893 = vperm.xlu0 %2337, %v835_v23  }
  0xb1   : > { %2082 = vmatpush3.bf16.msra.mxu1 %v2341_v29 }
  0xb2   : > { %2083 = vmatprep.subr.bf16.mxu1 %v2342_v33 }
  0xb3   : > { %2052 = vmatpush3.bf16.msra.mxu0 %v3000_v21  ;;  %868 = vperm.xlu1 %2338, %v830_v27  }
  0xb4   : > { %2053 = vmatprep.subr.bf16.mxu0 %v3013_v26  ;;  %863 = vperm.xlu0 %2337, %v829_v28  }
  0xb5   : > { %2084 = vmatpush3.bf16.msra.mxu1 %v2342_v33 }
  0xb6   : > { %2085 = vmatprep.subr.bf16.mxu1 %v2344_v37 }
  0xb7   : > { %2054 = vmatpush3.bf16.msra.mxu0 %v3013_v26  ;;  %878 = vperm.xlu1 %2338, %v832_v31  }
  0xb8   : > { %2055 = vmatprep.subr.bf16.mxu0 %v3025_v30  ;;  %873 = vperm.xlu0 %2337, %v831_v32  }
  0xb9   : > { %2086 = vmatpush3.bf16.msra.mxu1 %v2344_v37 }
  0xba   : > { %2087 = vmatprep.subr.bf16.mxu1 %v2346_v41 }
  0xbb   : > { %2056 = vmatpush3.bf16.msra.mxu0 %v3025_v30  ;;  %908 = vperm.xlu1 %2338, %v838_v35  }
  0xbc   : > { %2057 = vmatprep.subr.bf16.mxu0 %v3037_v34  ;;  %903 = vperm.xlu0 %2337, %v837_v36  }
  0xbd   : > { %2088 = vmatpush3.bf16.msra.mxu1 %v2346_v41 }
  0xbe   : > { %2089 = vmatprep.subr.bf16.mxu1 %v2348_v44 }
  0xbf   : > { %2058 = vmatpush3.bf16.msra.mxu0 %v3037_v34  ;;  %918 = vperm.xlu1 %2338, %v840_v39  }
  0xc0   : > { %2059 = vmatprep.subr.bf16.mxu0 %v3050_v38  ;;  %913 = vperm.xlu0 %2337, %v839_v40  }
  0xc1   : > { %2090 = vmatpush3.bf16.msra.mxu1 %v2348_v44 }
  0xc2   : > { %2091 = vmatprep.subr.bf16.mxu1 %v2350_v48 }
  0xc3   : > { %2060 = vmatpush3.bf16.msra.mxu0 %v3050_v38 }
  0xc4   : > { %2109 = vmatprep.subr.bf16.mxu0 %v2343_v43 }
  0xc5   : > { %2092 = vmatpush3.bf16.msra.mxu1 %v2350_v48 }
  0xc6   : > { %2062 = vmatmul.mubr.bf16.vlgmr.msra.gmra.mrb[0].mxu0 %v668_v45  ;;  %2201 = vmatprep.subr.bf16.mxu1 %v2343_v43 }
  0xc7   : > { %2065 = vmatprep.mubr.bf16.mxu0 %v669_v46  ;;  %2110 = vmatpush3.bf16.msra.mxu0 %v2343_v43 }
  0xc8   : > { %2111 = vmatprep.subr.bf16.mxu0 %v2345_v47  ;;  %2094 = vmatmul.mubr.bf16.vlgmr.msra.gmra.mrb[0].mxu1 %v2980_v15 }
  0xc9   : > { %2209 = vmatpush3.bf16.msra.mxu1 %v2343_v43  ;;  %2097 = vmatprep.mubr.bf16.mxu1 %v2990_v18 }
  0xca   : > { %2202 = vmatprep.subr.bf16.mxu1 %v2345_v47 }
  0xcb   : > { %2112 = vmatpush3.bf16.msra.mxu0 %v2345_v47 }
  0xcc   : > { %2113 = vmatprep.subr.bf16.mxu0 %v2347_v50 }
  0xcd   : > { %2210 = vmatpush3.bf16.msra.mxu1 %v2345_v47 }
  0xce   : > { %2066 = vmatmul.mubr.bf16.gmra.mrb[4].mxu0 %v670_v51  ;;  %2203 = vmatprep.subr.bf16.mxu1 %v2347_v50 }
  0xcf   : > { %2069 = vmatprep.mubr.bf16.mxu0 %v671_v52  ;;  %2114 = vmatpush3.bf16.msra.mxu0 %v2347_v50 }
  0xd0   : > { %2115 = vmatprep.subr.bf16.mxu0 %v2349_v53  ;;  %2098 = vmatmul.mubr.bf16.gmra.mrb[4].mxu1 %v3000_v21 }
  0xd1   : > { %2211 = vmatpush3.bf16.msra.mxu1 %v2347_v50  ;;  %2101 = vmatprep.mubr.bf16.mxu1 %v3013_v26 }
  0xd2   : > { %2204 = vmatprep.subr.bf16.mxu1 %v2349_v53 }
  0xd3   : > { %2116 = vmatpush3.bf16.msra.mxu0 %v2349_v53 }
  0xd4   : > { %2117 = vmatprep.subr.bf16.mxu0 %v2351_v55 }
  0xd5   : > { %2212 = vmatpush3.bf16.msra.mxu1 %v2349_v53 }
  0xd6   : > { %2070 = vmatmul.mubr.bf16.gmra.mrb[8].mxu0 %v672_v56  ;;  %2205 = vmatprep.subr.bf16.mxu1 %v2351_v55 }
  0xd7   : > { %2073 = vmatprep.mubr.bf16.mxu0 %v673_v57  ;;  %2118 = vmatpush3.bf16.msra.mxu0 %v2351_v55 }
  0xd8   : > { %2119 = vmatprep.subr.bf16.mxu0 %v2352_v58  ;;  %2102 = vmatmul.mubr.bf16.gmra.mrb[8].mxu1 %v3025_v30 }
  0xd9   : > { %2213 = vmatpush3.bf16.msra.mxu1 %v2351_v55  ;;  %2105 = vmatprep.mubr.bf16.mxu1 %v3037_v34 }
  0xda   : > { %2206 = vmatprep.subr.bf16.mxu1 %v2352_v58 }
  0xdb   : > { %2120 = vmatpush3.bf16.msra.mxu0 %v2352_v58 }
  0xdc   : > { %2121 = vmatprep.subr.bf16.mxu0 %v2353_v60 }
  0xdd   : > { %2214 = vmatpush3.bf16.msra.mxu1 %v2352_v58 }
  0xde   : > { %2074 = vmatmul.mubr.bf16.gmra.mrb[12].mxu0 %v674_v59  ;;  %2207 = vmatprep.subr.bf16.mxu1 %v2353_v60 }
  0xdf   : > { %2122 = vmatpush3.bf16.msra.mxu0 %v2353_v60 }
  0xe0   : > { %2106 = vmatmul.mubr.bf16.gmra.mrb[12].mxu1 %v3050_v38  ;;  %2123 = vmatprep.subr.bf16.mxu0 %v2354_v61 }
  0xe1   : > { %2215 = vmatpush3.bf16.msra.mxu1 %v2353_v60 }
  0xe2   : > { %2208 = vmatprep.subr.bf16.mxu1 %v2354_v61 }
  0xe3   : > { %2124 = vmatpush3.bf16.msra.mxu0 %v2354_v61 }
  0xe5   : > { %2216 = vmatpush3.bf16.msra.mxu1 %v2354_v61 }
 0x122   : > { %v854_v62 = vpop.permute.xlu1 %853  ;;  %v844_v63 = vpop.permute.xlu0 %843 }
 0x126   : > { %v859_v0 = vpop.permute.xlu1 %858 }
 0x127   : > { %v849_v1 = vpop.permute.xlu0 %848 }
 0x12a   : > { %v889_v2 = vpop.permute.xlu1 %888 }
 0x12b   : > { %v884_v3 = vpop.permute.xlu0 %883 }
 0x12e   : > { %v899_v4 = vpop.permute.xlu1 %898 }
 0x12f   : > { %v894_v5 = vpop.permute.xlu0 %893 }
 0x132   : > { %v869_v8 = vpop.permute.xlu1 %868 }
 0x133   : > { %v864_v10 = vpop.permute.xlu0 %863 }
 0x136   : > { %v879_v18 = vpop.permute.xlu1 %878 }
 0x137   : > { %v874_v20 = vpop.permute.xlu0 %873 }
 0x13a   : > { %v909_v35 = vpop.permute.xlu1 %908 }
 0x13b   : > { %v904_v43 = vpop.permute.xlu0 %903 }
 0x13e   : > { %v919_v51 = vpop.permute.xlu1 %918 }
 0x13f   : > { %v914_v53 = vpop.permute.xlu0 %913 }
 0x199   : > { %v2063_v6 = vpop.f32.mrb[0].mxu0 }
 0x19a   : > { %v709_v7 = vpop.f32.mrb[1].mxu0  ;;  %v923_v11 = vmul.f32 %v2063_v6, %v854_v62 }
 0x19b   : > { %v2064_v9 = vpop.f32.mrb[2].mxu0  ;;  %v921_v14 = vmul.f32 %v844_v63, %v709_v7  ;;  %v2095_v23 = vpop.f32.mrb[0].mxu1  ;;  %v3085_v63 = vld [vmem:[%s504_s13] ss:$0 sm:$0xff]  ;;  %s1966_s13 = sshll.u32 %s3418_s24, 6 }
 0x19c   : > { %v924_v12 = vmul.f32 %v2064_v9, %v859_v0  ;;  %v712_v13 = vpop.f32.mrb[3].mxu0  ;;  %v1072_v27 = vpop.f32.mrb[1].mxu1  ;;  %s3184_s24 = scalar_lea.vmem [#allocation3], %s1966_s13 }
 0x19d   : > { %v922_v15 = vmul.f32 %v849_v1, %v712_v13  ;;  %v2096_v30 = vpop.f32.mrb[2].mxu1 }
 0x19e   : > { %v951_v16 = vpack.c.bf16 %v924_v12, %v923_v11  ;;  %v1075_v32 = vpop.f32.mrb[3].mxu1 }
 0x19f   : > { %v950_v17 = vpack.c.bf16 %v922_v15, %v921_v14 }
 0x1a1   : > { %v2067_v19 = vpop.f32.mrb[4].mxu0  ;;  %2125 = vmatprep.mubr.bf16.mxu0 %v950_v17 }
 0x1a2   : > { %v725_v21 = vpop.f32.mrb[5].mxu0  ;;  %2126 = vmatmul.mubr.bf16.vlgmr.msra.gmra.mrb[16].mxu0 %v951_v16  ;;  %v927_v24 = vmul.f32 %v2067_v19, %v874_v20 }
 0x1a3   : > { %v2068_v22 = vpop.f32.mrb[6].mxu0  ;;  %v925_v28 = vmul.f32 %v864_v10, %v725_v21  ;;  %v2099_v38 = vpop.f32.mrb[4].mxu1 }
 0x1a4   : > { %v928_v25 = vmul.f32 %v2068_v22, %v879_v18  ;;  %v728_v26 = vpop.f32.mrb[7].mxu0  ;;  %v1088_v42 = vpop.f32.mrb[5].mxu1 }
 0x1a5   : > { %v926_v29 = vmul.f32 %v869_v8, %v728_v26  ;;  %v2100_v46 = vpop.f32.mrb[6].mxu1 }
 0x1a6   : > { %v953_v31 = vpack.c.bf16 %v928_v25, %v927_v24  ;;  %v1091_v48 = vpop.f32.mrb[7].mxu1 }
 0x1a7   : > { %v952_v33 = vpack.c.bf16 %v926_v29, %v925_v28 }
 0x1a9   : > { %v2071_v34 = vpop.f32.mrb[8].mxu0  ;;  %2129 = vmatprep.mubr.bf16.mxu0 %v952_v33 }
 0x1aa   : > { %v741_v36 = vpop.f32.mrb[9].mxu0  ;;  %2130 = vmatmul.mubr.bf16.gmra.mrb[20].mxu0 %v953_v31  ;;  %v931_v39 = vmul.f32 %v2071_v34, %v894_v5 }
 0x1ab   : > { %v2072_v37 = vpop.f32.mrb[10].mxu0  ;;  %v929_v44 = vmul.f32 %v884_v3, %v741_v36 }
 0x1ac   : > { %v932_v40 = vmul.f32 %v2072_v37, %v899_v4  ;;  %v744_v41 = vpop.f32.mrb[11].mxu0 }
 0x1ad   : > { %v930_v45 = vmul.f32 %v889_v2, %v744_v41 }
 0x1ae   : > { %v955_v47 = vpack.c.bf16 %v932_v40, %v931_v39 }
 0x1af   : > { %v954_v49 = vpack.c.bf16 %v930_v45, %v929_v44 }
 0x1b1   : > { %v2075_v50 = vpop.f32.mrb[12].mxu0  ;;  %2133 = vmatprep.mubr.bf16.mxu1 %v954_v49 }
 0x1b2   : > { %v757_v52 = vpop.f32.mrb[13].mxu0  ;;  %2134 = vmatmul.mubr.bf16.vlgmr.msra.gmra.mrb[8].mxu1 %v955_v47  ;;  %v935_v55 = vmul.f32 %v2075_v50, %v914_v53 }
 0x1b3   : > { %v2076_v54 = vpop.f32.mrb[14].mxu0  ;;  %v933_v58 = vmul.f32 %v904_v43, %v757_v52 }
 0x1b4   : > { %v936_v56 = vmul.f32 %v2076_v54, %v919_v51  ;;  %v760_v57 = vpop.f32.mrb[15].mxu0 }
 0x1b5   : > { %v934_v59 = vmul.f32 %v909_v35, %v760_v57 }
 0x1b6   : > { %v957_v60 = vpack.c.bf16 %v936_v56, %v935_v55 }
 0x1b7   : > { %v956_v61 = vpack.c.bf16 %v934_v59, %v933_v58 }
 0x1b9   : > { %2137 = vmatprep.mubr.bf16.mxu1 %v956_v61 }
 0x1ba   : > { %2138 = vmatmul.mubr.bf16.gmra.mrb[12].mxu1 %v957_v60 }
 0x275   : > { %v2127_v62 = vpop.f32.mrb[16].mxu0 }
 0x276   : > { %v1226_v0 = vadd.f32 %v2127_v62, %v2095_v23  ;;  %v1217_v1 = vpop.f32.mrb[17].mxu0 }
 0x277   : > { %v1218_v2 = vadd.f32 %v1217_v1, %v1072_v27  ;;  %v2128_v3 = vpop.f32.mrb[18].mxu0 }
 0x278   : > { %v3088_v4 = vadd.f32 %v3085_v63, %v1226_v0  ;;  %v1229_v5 = vadd.f32 %v2128_v3, %v2096_v30  ;;  %v1220_v6 = vpop.f32.mrb[19].mxu0 }
 0x279   : > { %v1221_v7 = vadd.f32 %v1220_v6, %v1075_v32  ;;  %v3091_v8 = vadd.f32 %v3085_v63, %v1218_v2 }
 0x27a   : > { %v1305_v9 = vmul.f32 %v3088_v4, %v3088_v4  ;;  %v3101_v13 = vadd.f32 %v3085_v63, %v1229_v5 }
 0x27b   : > { %v3096_v10 = vadd.f32 %v3085_v63, %v1221_v7  ;;  %v1303_v16 = vmul.f32 %v3091_v8, %v3091_v8 }
 0x27c   : > { %1323 = vadd.xlane.f32.xlu0 %v1305_v9  ;;  %v1306_v26 = vmul.f32 %v3101_v13, %v3101_v13 }
 0x27d   : > { %v2131_v11 = vpop.f32.mrb[20].mxu0  ;;  %v1304_v12 = vmul.f32 %v3096_v10, %v3096_v10 }
 0x27e   : > { %v1242_v14 = vadd.f32 %v2131_v11, %v2099_v38  ;;  %v1233_v15 = vpop.f32.mrb[21].mxu0 }
 0x27f   : > { %v1234_v17 = vadd.f32 %v1233_v15, %v1088_v42  ;;  %v2132_v18 = vpop.f32.mrb[22].mxu0  ;;  %1321 = vadd.xlane.f32.xlu1 %v1304_v12 }
 0x280   : > { %v3106_v19 = vadd.f32 %v3085_v63, %v1242_v14  ;;  %v1245_v20 = vadd.f32 %v2132_v18, %v2100_v46  ;;  %v1236_v21 = vpop.f32.mrb[23].mxu0  ;;  %1319 = vadd.xlane.f32.xlu0 %v1303_v16  ;;  %v1417_v14 = vstv %s1416_s16 }
 0x281   : > { %v1237_v22 = vadd.f32 %v1236_v21, %v1091_v48  ;;  %v3109_v23 = vadd.f32 %v3085_v63, %v1234_v17  ;;  %vm3174_vm0 = vcmp.eq.s32.totalorder %v1417_v14, 1 }
 0x282   : > { %v3112_v24 = vadd.f32 %v3085_v63, %v1245_v20  ;;  %v1309_v25 = vmul.f32 %v3106_v19, %v3106_v19 }
 0x283   : > { %v3119_v28 = vadd.f32 %v3085_v63, %v1237_v22  ;;  %v1307_v31 = vmul.f32 %v3109_v23, %v3109_v23 }
 0x284   : > { %1331 = vadd.xlane.f32.xlu1 %v1309_v25  ;;  %1325 = vadd.xlane.f32.xlu0 %v1306_v26  ;;  %v1310_v32 = vmul.f32 %v3112_v24, %v3112_v24 }
 0x285   : > { %v2135_v27 = vpop.f32.mrb[8].mxu1  ;;  %v1308_v38 = vmul.f32 %v3119_v28, %v3119_v28 }
 0x286   : > { %v3122_v29 = vadd.f32 %v2135_v27, %v3085_v63  ;;  %v1249_v30 = vpop.f32.mrb[9].mxu1 }
 0x287   : > { %v2136_v33 = vpop.f32.mrb[10].mxu1  ;;  %v3129_v35 = vadd.f32 %v3085_v63, %v1249_v30 }
 0x288   : > { %v1252_v34 = vpop.f32.mrb[11].mxu1  ;;  %1327 = vadd.xlane.f32.xlu1 %v1307_v31  ;;  %1333 = vadd.xlane.f32.xlu0 %v1310_v32  ;;  %v3132_v36 = vadd.f32 %v2136_v33, %v3085_v63  ;;  %v1313_v37 = vmul.f32 %v3122_v29, %v3122_v29 }
 0x289   : > { %v3139_v40 = vadd.f32 %v3085_v63, %v1252_v34  ;;  %v1311_v42 = vmul.f32 %v3129_v35, %v3129_v35 }
 0x28a   : > { %v1314_v43 = vmul.f32 %v3132_v36, %v3132_v36 }
 0x28b   : > { %v1312_v50 = vmul.f32 %v3139_v40, %v3139_v40 }
 0x28c   : > { %1339 = vadd.xlane.f32.xlu1 %v1313_v37  ;;  %1329 = vadd.xlane.f32.xlu0 %v1308_v38 }
 0x28d   : > { %v2139_v39 = vpop.f32.mrb[12].mxu1 }
 0x28e   : > { %v1265_v41 = vpop.f32.mrb[13].mxu1  ;;  %v3151_v48 = vadd.f32 %v2139_v39, %v3085_v63 }
 0x28f   : > { %v3146_v44 = vadd.f32 %v3085_v63, %v1265_v41  ;;  %v2140_v45 = vpop.f32.mrb[14].mxu1 }
 0x290   : > { %1335 = vadd.xlane.f32.xlu1 %v1311_v42  ;;  %1341 = vadd.xlane.f32.xlu0 %v1314_v43  ;;  %v1268_v46 = vpop.f32.mrb[15].mxu1  ;;  %v3159_v51 = vadd.f32 %v2140_v45, %v3085_v63  ;;  %v1317_v52 = vmul.f32 %v3151_v48, %v3151_v48 }
 0x291   : > { %v1315_v47 = vmul.f32 %v3146_v44, %v3146_v44  ;;  %v3154_v49 = vadd.f32 %v3085_v63, %v1268_v46 }
 0x292   : > { %v1318_v54 = vmul.f32 %v3159_v51, %v3159_v51 }
 0x293   : > { %v1316_v53 = vmul.f32 %v3154_v49, %v3154_v49 }
 0x294   : > { %1337 = vadd.xlane.f32.xlu0 %v1312_v50  ;;  %1343 = vadd.xlane.f32.xlu1 %v1315_v47 }
 0x298   : > { %1347 = vadd.xlane.f32.xlu1 %v1317_v52  ;;  %1345 = vadd.xlane.f32.xlu0 %v1316_v53 }
 0x29c   : > { %1349 = vadd.xlane.f32.xlu0 %v1318_v54 }
 0x309   : > { %v1324_v55 = vpop.xlane.xlu0 %1323 }
 0x30a   : > { %v1353_v56 = vmax.f32 %v1324_v55, 1e-24 }
 0x30c   : > { %v1322_v57 = vpop.xlane.xlu1 %1321  ;;  %2355 = vrsqrt.f32 %v1353_v56 }
 0x30d   : > { %v1352_v58 = vmax.f32 %v1322_v57, 1e-24  ;;  %v1320_v59 = vpop.xlane.xlu0 %1319 }
 0x30e   : > { %v1351_v60 = vmax.f32 %v1320_v59, 1e-24 }
 0x30f   : > { %2357 = vrsqrt.f32 %v1352_v58 }
 0x310   : > { %2359 = vrsqrt.f32 %v1351_v60 }
 0x311   : > { %v1332_v61 = vpop.xlane.xlu1 %1331  ;;  %v1326_v62 = vpop.xlane.xlu0 %1325 }
 0x312   : > { %v1357_v63 = vmax.f32 %v1332_v61, 1e-24  ;;  %v1354_v0 = vmax.f32 %v1326_v62, 1e-24 }
 0x314   : > { %2361 = vrsqrt.f32 %v1357_v63 }
 0x315   : > { %2363 = vrsqrt.f32 %v1354_v0  ;;  %v1328_v1 = vpop.xlane.xlu1 %1327  ;;  %v1334_v2 = vpop.xlane.xlu0 %1333 }
 0x316   : > { %v1355_v3 = vmax.f32 %v1328_v1, 1e-24  ;;  %v1358_v5 = vmax.f32 %v1334_v2, 1e-24  ;;  %v2356_v6 = vpop.eup %2355 }
 0x317   : > { %v1385_v20 = vmul.f32 %v2356_v6, %v3088_v4 }
 0x318   : > { %2365 = vrsqrt.f32 %v1355_v3 }
 0x319   : > { %v2358_v7 = vpop.eup %2357  ;;  %2367 = vrsqrt.f32 %v1358_v5  ;;  %v1340_v9 = vpop.xlane.xlu1 %1339  ;;  %v1402_v34 = vmax.f32 %v1385_v20, 0.0 }
 0x31a   : > { %v1330_v11 = vpop.xlane.xlu0 %1329  ;;  %v2360_v12 = vpop.eup %2359  ;;  %v1384_v15 = vmul.f32 %v2358_v7, %v3096_v10  ;;  %v1361_v16 = vmax.f32 %v1340_v9, 1e-24 }
 0x31b   : > { %v1356_v17 = vmax.f32 %v1330_v11, 1e-24  ;;  %v1383_v18 = vmul.f32 %v2360_v12, %v3091_v8 }
 0x31c   : > { %v1401_v21 = vmax.f32 %v1384_v15, 0.0  ;;  %2369 = vrsqrt.f32 %v1361_v16 }
 0x31d   : > { %v1400_v25 = vmax.f32 %v1383_v18, 0.0  ;;  %2371 = vrsqrt.f32 %v1356_v17  ;;  %v1336_v26 = vpop.xlane.xlu1 %1335 }
 0x31e   : > { %v1342_v27 = vpop.xlane.xlu0 %1341  ;;  %v2362_v30 = vpop.eup %2361  ;;  %v1420_v10 = vsel %vm3174_vm0, %v1401_v21, %v1384_v15  ;;  %v1359_v31 = vmax.f32 %v1336_v26, 1e-24 }
 0x31f   : > { %v1362_v32 = vmax.f32 %v1342_v27, 1e-24  ;;  %v2364_v8 = vpop.eup %2363  ;;  %v1419_v4 = vsel %vm3174_vm0, %v1400_v25, %v1383_v18  ;;  %v1389_v33 = vmul.f32 %v2362_v30, %v3106_v19 }
 0x320   : > { %v1435_v37 = vpack.c.bf16 %v1420_v10, %v1419_v4  ;;  %v1386_v38 = vmul.f32 %v2364_v8, %v3101_v13  ;;  %2373 = vrsqrt.f32 %v1359_v31  ;;  %v1421_v13 = vsel %vm3174_vm0, %v1402_v34, %v1385_v20 }
 0x321   : > { %2375 = vrsqrt.f32 %v1362_v32  ;;  %v1344_v41 = vpop.xlane.xlu1 %1343  ;;  %v1406_v50 = vmax.f32 %v1389_v33, 0.0 }
 0x322   : > { %v1338_v39 = vpop.xlane.xlu0 %1337  ;;  %v2366_v42 = vpop.eup %2365  ;;  %1447 = vst [vmem:[%s3184_s24] sm:$0xff] %v1435_v37  ;;  %v1403_v43 = vmax.f32 %v1386_v38, 0.0  ;;  %v1363_v46 = vmax.f32 %v1344_v41, 1e-24 }
 0x323   : > { %v1360_v45 = vmax.f32 %v1338_v39, 1e-24  ;;  %v2368_v47 = vpop.eup %2367  ;;  %v1387_v19 = vmul.f32 %v2366_v42, %v3109_v23  ;;  %v1425_v23 = vsel %vm3174_vm0, %v1406_v50, %v1389_v33 }
 0x324   : > { %v1422_v52 = vsel %vm3174_vm0, %v1403_v43, %v1386_v38  ;;  %v1390_v53 = vmul.f32 %v2368_v47, %v3112_v24  ;;  %v2388_v47 = vld [vmem:[%s3354_s7 + $0x8] sm:$0xff] (%p1455_p0)  }
 0x325   : > { %2377 = vrsqrt.f32 %v1360_v45  ;;  %v1436_v54 = vpack.c.bf16 %v1422_v52, %v1421_v13  ;;  %v1348_v55 = vpop.xlane.xlu1 %1347  ;;  %v1404_v62 = vmax.f32 %v1387_v19, 0.0  ;;  %v2619_v45 = vmov (%p1455_p0), 0.0   ;;  %v2389_v13 = vld [vmem:[%s3354_s7 + $0x10] sm:$0xff] (%p1455_p0)   ;;  %v2390_v52 = vld [vmem:[%s3354_s7 + $0x18] sm:$0xff] (%p1455_p0)  }
 0x326   : > { %2379 = vrsqrt.f32 %v1363_v46  ;;  %v1346_v56 = vpop.xlane.xlu0 %1345  ;;  %v2370_v57 = vpop.eup %2369  ;;  %v1407_v58 = vmax.f32 %v1390_v53, 0.0  ;;  %v1365_v59 = vmax.f32 %v1348_v55, 1e-24  ;;  %2141 = vmatprep.subr.bf16.mxu0 (%p1455_p0), %v2619_v45  ;;  %2157 = vmatprep.mubr.msk.bf16.mxu0 (%p1455_p0), %vm2620_vm1, %v2619_v45  ;;  %v2387_v46 = vld [vmem:[%s3354_s7] sm:$0xff] (%p1455_p0)  }
 0x327   : > { %v1364_v60 = vmax.f32 %v1346_v56, 1e-24  ;;  %v2372_v61 = vpop.eup %2371  ;;  %1448 = vst [vmem:[%s3184_s24 + $0x8] sm:$0xff] %v1436_v54  ;;  %v1393_v24 = vmul.f32 %v2370_v57, %v3122_v29  ;;  %v1423_v9 = vsel %vm3174_vm0, %v1404_v62, %v1387_v19  ;;  %2161 = vmatprep.subr.bf16.mxu1 (%p1455_p0), %v2619_v45  ;;  %2177 = vmatprep.mubr.msk.bf16.mxu1 (%p1455_p0), %vm2620_vm1, %v2619_v45  ;;  %v2391_v54 = vld [vmem:[%s3354_s7 + $0x20] sm:$0xff] (%p1455_p0)   ;;  %v2392_v56 = vld [vmem:[%s3354_s7 + $0x28] sm:$0xff] (%p1455_p0)  }
 0x328   : > { %v1426_v63 = vsel %vm3174_vm0, %v1407_v58, %v1390_v53  ;;  %v1388_v0 = vmul.f32 %v2372_v61, %v3119_v28  ;;  %2381 = vrsqrt.f32 %v1365_v59  ;;  %2162 = vmatpush3.bf16.msra.mxu1 (%p1455_p0), %v2387_v46  ;;  %v2393_v58 = vld [vmem:[%s3354_s7 + $0x30] sm:$0xff] (%p1455_p0)   ;;  %v2394_v61 = vld [vmem:[%s3354_s7 + $0x38] sm:$0xff] (%p1455_p0)   ;;  %v2396_v62 = vld [vmem:[#allocation10 + $0x8] sm:$0xff] (%p1455_p0)  }
 0x329   : > { %v1438_v1 = vpack.c.bf16 %v1426_v63, %v1425_v23  ;;  %2383 = vrsqrt.f32 %v1364_v60  ;;  %v1410_v12 = vmax.f32 %v1393_v24, 0.0  ;;  %2163 = vmatprep.subr.bf16.mxu1 (%p1455_p0), %v2619_v45  ;;  %v1473_v60 = vld [vmem:[%s3353_s6] sm:$0xf] (%p1455_p0)  ;;  %v2397_v63 = vld [vmem:[#allocation10 + $0x10] sm:$0xff] (%p1455_p0)  }
 0x32a   : > { %v1350_v2 = vpop.xlane.xlu0 %1349  ;;  %v2374_v3 = vpop.eup %2373  ;;  %v1405_v5 = vmax.f32 %v1388_v0, 0.0  ;;  %v2395_v23 = vld [vmem:[#allocation10] sm:$0xff] (%p1455_p0)  }
 0x32b   : > { %v1366_v6 = vmax.f32 %v1350_v2, 1e-24  ;;  %v2376_v7 = vpop.eup %2375  ;;  %1450 = vst [vmem:[%s3184_s24 + $0x18] sm:$0xff] %v1438_v1  ;;  %v1391_v11 = vmul.f32 %v2374_v3, %v3129_v35  ;;  %v1429_v35 = vsel %vm3174_vm0, %v1410_v12, %v1393_v24  ;;  %v2398_v24 = vld [vmem:[#allocation10 + $0x18] sm:$0xff] (%p1455_p0)   ;;  %v2400_v1 = vld [vmem:[#allocation10 + $0x28] sm:$0xff] (%p1455_p0)  }
 0x32c   : > { %v1424_v29 = vsel %vm3174_vm0, %v1405_v5, %v1388_v0  ;;  %v1394_v28 = vmul.f32 %v2376_v7, %v3132_v36  ;;  %2164 = vmatpush3.bf16.msra.mxu1 (%p1455_p0), %v2388_v47  ;;  %v2399_v0 = vld [vmem:[#allocation10 + $0x20] sm:$0xff] (%p1455_p0)  }
 0x32d   : > { %2385 = vrsqrt.f32 %v1366_v6  ;;  %v1437_v14 = vpack.c.bf16 %v1424_v29, %v1423_v9  ;;  %v1408_v18 = vmax.f32 %v1391_v11, 0.0  ;;  %2165 = vmatprep.subr.bf16.mxu1 (%p1455_p0), %v2619_v45  ;;  %v2401_v9 = vld [vmem:[#allocation10 + $0x30] sm:$0xff] (%p1455_p0)  }
 0x32e   : > { %v1411_v16 = vmax.f32 %v1394_v28, 0.0  ;;  %v1466_v22 = vld [vmem:[%s3184_s24 + $0x8] sm:$0xff] (%p1455_p0) }
 0x32f   : > { %v2378_v15 = vpop.eup %2377  ;;  %1449 = vst [vmem:[%s3184_s24 + $0x10] sm:$0xff] %v1437_v14  ;;  %v1427_v10 = vsel %vm3174_vm0, %v1408_v18, %v1391_v11  ;;  %v2402_v11 = vld [vmem:[#allocation10 + $0x38] sm:$0xff] (%p1455_p0)  }
 0x330   : > { %v2380_v17 = vpop.eup %2379  ;;  %v1392_v20 = vmul.f32 %v2378_v15, %v3139_v40  ;;  %v1430_v21 = vsel %vm3174_vm0, %v1411_v16, %v1394_v28  ;;  %2166 = vmatpush3.bf16.msra.mxu1 (%p1455_p0), %v2389_v13 }
 0x331   : > { %v1395_v25 = vmul.f32 %v2380_v17, %v3146_v44  ;;  %v1440_v36 = vpack.c.bf16 %v1430_v21, %v1429_v35  ;;  %2167 = vmatprep.subr.bf16.mxu1 (%p1455_p0), %v2619_v45 }
 0x332   : > { %v1409_v26 = vmax.f32 %v1392_v20, 0.0  ;;  %v2382_v27 = vpop.eup %2381  ;;  %v1468_v19 = vld [vmem:[%s3184_s24 + $0x18] sm:$0xff] (%p1455_p0) }
 0x333   : > { %v2384_v30 = vpop.eup %2383  ;;  %1452 = vst [vmem:[%s3184_s24 + $0x28] sm:$0xff] %v1440_v36  ;;  %v1397_v31 = vmul.f32 %v2382_v27, %v3151_v48  ;;  %v1412_v8 = vmax.f32 %v1395_v25, 0.0 }
 0x334   : > { %v1428_v40 = vsel %vm3174_vm0, %v1409_v26, %v1392_v20  ;;  %v1396_v4 = vmul.f32 %v2384_v30, %v3154_v49  ;;  %2168 = vmatpush3.bf16.msra.mxu1 (%p1455_p0), %v2390_v52  ;;  %v1947_v20 = vld [vmem:[%s3400_s12] ss:$0 sm:$0xff] (%p1455_p0) }
 0x335   : > { %v1439_v32 = vpack.c.bf16 %v1428_v40, %v1427_v10  ;;  %v1414_v34 = vmax.f32 %v1397_v31, 0.0  ;;  %v1431_v38 = vsel %vm3174_vm0, %v1412_v8, %v1395_v25  ;;  %2169 = vmatprep.subr.bf16.mxu1 (%p1455_p0), %v2619_v45 }
 0x336   : > { %v1413_v33 = vmax.f32 %v1396_v4, 0.0  ;;  %v1467_v50 = vld [vmem:[%s3184_s24 + $0x10] sm:$0xff] (%p1455_p0) }
 0x337   : > { %v2386_v44 = vpop.eup %2385  ;;  %1451 = vst [vmem:[%s3184_s24 + $0x20] sm:$0xff] %v1439_v32  ;;  %v1433_v48 = vsel %vm3174_vm0, %v1414_v34, %v1397_v31 }
 0x338   : > { %v1398_v37 = vmul.f32 %v2386_v44, %v3159_v51  ;;  %v1432_v39 = vsel %vm3174_vm0, %v1413_v33, %v1396_v4  ;;  %v1465_v51 = vld [vmem:[%s3184_s24] sm:$0xff] (%p1455_p0)  ;;  %2170 = vmatpush3.bf16.msra.mxu1 (%p1455_p0), %v2391_v54 }
 0x339   : > { %v1441_v41 = vpack.c.bf16 %v1432_v39, %v1431_v38  ;;  %1461 = sbr.rel (!%p1455_p0) target bundleno = 1503 (0x5df), region = 96  ;;  %2142 = vmatpush3.bf16.msra.mxu0 (%p1455_p0), %v1465_v51  ;;  %2171 = vmatprep.subr.bf16.mxu1 (%p1455_p0), %v2619_v45 }
 0x33a   : > { %v1415_v42 = vmax.f32 %v1398_v37, 0.0  ;;  %2143 = vmatprep.subr.bf16.mxu0 (%p1455_p0), %v2619_v45  ;;  %v1470_v55 = vld [vmem:[%s3184_s24 + $0x28] sm:$0xff] (%p1455_p0) }
 0x33b   : > { %1453 = vst [vmem:[%s3184_s24 + $0x30] sm:$0xff] %v1441_v41 }
 0x33c   : > { %v1434_v49 = vsel %vm3174_vm0, %v1415_v42, %v1398_v37  ;;  %2172 = vmatpush3.bf16.msra.mxu1 (%p1455_p0), %v2392_v56 }
 0x33d   : > { %v1442_v43 = vpack.c.bf16 %v1434_v49, %v1433_v48  ;;  %2144 = vmatpush3.bf16.msra.mxu0 (%p1455_p0), %v1466_v22  ;;  %2173 = vmatprep.subr.bf16.mxu1 (%p1455_p0), %v2619_v45 }
 0x33e   : > { %2145 = vmatprep.subr.bf16.mxu0 (%p1455_p0), %v2619_v45  ;;  %v1469_v53 = vld [vmem:[%s3184_s24 + $0x20] sm:$0xff] (%p1455_p0) }
 0x33f   : > { %1454 = vst [vmem:[%s3184_s24 + $0x38] sm:$0xff] %v1442_v43 }
 0x340   : > { %2174 = vmatpush3.bf16.msra.mxu1 %v2393_v58 }
 0x341   : > { %2146 = vmatpush3.bf16.msra.mxu0 %v1467_v50  ;;  %2175 = vmatprep.subr.bf16.mxu1 %v2619_v45 }
 0x342   : > { %2147 = vmatprep.subr.bf16.mxu0 %v2619_v45  ;;  %v1471_v57 = vld [vmem:[%s3184_s24 + $0x30] sm:$0xff] }
 0x344   : > { %2176 = vmatpush3.bf16.msra.mxu1 %v2394_v61 }
 0x345   : > { %2148 = vmatpush3.bf16.msra.mxu0 %v1468_v19 }
 0x346   : > { %2149 = vmatprep.subr.bf16.mxu0 %v2619_v45  ;;  %v1472_v59 = vld [vmem:[%s3184_s24 + $0x38] sm:$0xff]  ;;  %s3399_s24 = sld [smem:[#allocation23_spill]] }
 0x349   : > { %2150 = vmatpush3.bf16.msra.mxu0 %v1469_v53 }
 0x34a   : > { %2151 = vmatprep.subr.bf16.mxu0 %v2619_v45 }
 0x34c   : > { %v1938_v12 = vld [vmem:[%s3399_s24] ss:$0 sm:$0xff] }
 0x34d   : > { %2152 = vmatpush3.bf16.msra.mxu0 %v1470_v55 }
 0x34e   : > { %2153 = vmatprep.subr.bf16.mxu0 %v2619_v45 }
 0x351   : > { %2154 = vmatpush3.bf16.msra.mxu0 %v1471_v57 }
 0x352   : > { %2155 = vmatprep.subr.bf16.mxu0 %v2619_v45 }
 0x355   : > { %2156 = vmatpush3.bf16.msra.mxu0 %v1472_v59 }
 0x356   : > { %2181 = vmatprep.subr.bf16.mxu0 %v2619_v45 }
 0x358   : > { %2158 = vmatmul.mubr.bf16.vlgmr.msra.gmra.mrb[0].mxu0 %v1473_v60 }
 0x359   : > { %2197 = vmatprep.mubr.msk.bf16.mxu0 %vm2620_vm1, %v2619_v45  ;;  %2182 = vmatpush3.bf16.msra.mxu0 %v2395_v23 }
 0x35a   : > { %2183 = vmatprep.subr.bf16.mxu0 %v2619_v45 }
 0x35d   : > { %2184 = vmatpush3.bf16.msra.mxu0 %v2396_v62 }
 0x35e   : > { %2185 = vmatprep.subr.bf16.mxu0 %v2619_v45 }
 0x361   : > { %2186 = vmatpush3.bf16.msra.mxu0 %v2397_v63 }
 0x362   : > { %2187 = vmatprep.subr.bf16.mxu0 %v2619_v45 }
 0x365   : > { %2188 = vmatpush3.bf16.msra.mxu0 %v2398_v24 }
 0x366   : > { %2189 = vmatprep.subr.bf16.mxu0 %v2619_v45 }
 0x369   : > { %2190 = vmatpush3.bf16.msra.mxu0 %v2399_v0 }
 0x36a   : > { %2191 = vmatprep.subr.bf16.mxu0 %v2619_v45 }
 0x36d   : > { %2192 = vmatpush3.bf16.msra.mxu0 %v2400_v1 }
 0x36e   : > { %2193 = vmatprep.subr.bf16.mxu0 %v2619_v45 }
 0x371   : > { %2194 = vmatpush3.bf16.msra.mxu0 %v2401_v9 }
 0x372   : > { %2195 = vmatprep.subr.bf16.mxu0 %v2619_v45 }
 0x375   : > { %2196 = vmatpush3.bf16.msra.mxu0 %v2402_v11 }
 0x42b   : > { %v1508_v2 = vpop.f32.mrb[0].mxu0 }
 0x42c   : > { %v1514_v3 = vpack.c.bf16 %v1508_v2, %v1508_v2  ;;  %v2159_v5 = vpop.f32.mrb[1].mxu0 }
 0x42d   : > { %v1511_v6 = vpop.f32.mrb[2].mxu0 }
 0x42e   : > { %v2160_v7 = vpop.f32.mrb[3].mxu0  ;;  %2178 = vmatmul.mubr.bf16.vlgmr.msra.gmra.mrb[0].mxu1 %v1514_v3 }
 0x501   : > { %v1620_v29 = vpop.f32.mrb[0].mxu1 }
 0x502   : > { %v1621_v28 = vadd.f32 %v1938_v12, %v1620_v29  ;;  %v2179_v14 = vpop.f32.mrb[1].mxu1 }
 0x503   : > { %v1623_v15 = vpop.f32.mrb[2].mxu1 }
 0x504   : > { %v1626_v16 = vmax.f32 %v1621_v28, 0.0  ;;  %v2180_v17 = vpop.f32.mrb[3].mxu1 }
 0x506   : > { %v1627_v18 = vpack.c.bf16 %v1626_v16, %v1626_v16 }
 0x508   : > { %2198 = vmatmul.mubr.bf16.vlgmr.msra.gmra.mrb[4].mxu0 %v1627_v18 }
 0x5db   : > { %v1733_v35 = vpop.f32.mrb[4].mxu0 }
 0x5dc   : > { %v1734_v21 = vadd.f32 %v1947_v20, %v1733_v35  ;;  %v2199_v25 = vpop.f32.mrb[5].mxu0 }
 0x5dd   : > { %v1736_v36 = vpop.f32.mrb[6].mxu0 }
 0x5de   : > { %1739 = vst [vmem:[#allocation12] sm:$0xff] %v1734_v21  ;;  %v2200_v26 = vpop.f32.mrb[7].mxu0 }
 0x5df PF: > { %p2268_p1 = scmp.eq.s32.totalorder %s2783_s14, 2  ;;  %s2621_s26 = smov [#allocation12]  }
 0x5e0   : > { %s1747_s30 = sshll.u32 %s2621_s26, 4  ;;  %s1748_s30 = int_to_ptr.vmem [resolvable:$true] %s1747_s30 }
 0x5e1   : > { %s2519_s3 = scalar_lea.vmem %s1748_s30, 128  ;;  %p2526_p11 = scmp.lt.s32.totalorder %s1748_s30, %s1748_s30 }
 0x5e2   : > { %p2520_p4 = scmp.ne.s32.totalorder %s1748_s30, %s2519_s3  ;;  %p2527_p6 = scmp.lt.s32.totalorder %s2519_s3, %s2519_s3 }
 0x5e4   : > { %p2521_p10 = pnand %p2520_p4, %p2268_p1  ;;  %p2528_p3 = por %p2527_p6, %p2526_p11 }
 0x5e6   : > { %p2522_p7 = pneg %p2521_p10 }
 0x5e8   : > { %p2529_p8 = pnand %p2528_p3, %p2522_p7 }
 0x5ea   : > { %2532 = shalt.err (!%p2529_p8)
}
 0x5eb   : > { %s3401_s15 = sld [smem:[#allocation25_spill]] }
 0x5f1   : > { %s2533_s10 = scalar_lea.hbm %s3401_s15, 128 }
 0x5f2   : > { %p2534_p5 = scmp.ne.s32.totalorder %s3401_s15, %s2533_s10  ;;  %p2539_p2 = scmp.lt.u32.totalorder %s2533_s10, %s3401_s15 }
 0x5f4   : > { %p2535_p13 = pnand %p2534_p5, %p2268_p1 }
 0x5f6   : > { %p2536_p9 = pneg %p2535_p13 }
 0x5f8   : > { %p2541_p12 = pnand %p2539_p2, %p2536_p9 }
 0x5fa   : > { %2544 = shalt.err (!%p2541_p12)
}
 0x5fb   : > { %2246 = dma.vmem_to_hbm [thread:$0]  (%p2268_p1), %s1748_s30, 128, %s3401_s15, [#allocation6]  }
 0x5fc   : > { %2582 = dma.done.wait (%p2268_p1), [#allocation6], 128  }
 0x5fd   : > { %2584 = vsyncadd (%p2268_p1), [#allocation6], 4294967168 }
 0x5fe PF: > { %s3402_s17 = sld [smem:[#allocation19_spill]]  ;;  %s3403_s29 = sld [smem:[#allocation17_spill]] }
 0x5ff   : > { %s3404_s19 = sld [smem:[#allocation21_spill]]  ;;  %s3405_s20 = sld [smem:[#allocation18_spill]] }
 0x600   : > { %s3406_s21 = sld [smem:[#allocation20_spill]] }
 0x604   : > { %s27_s22 = sadd.s32 1, %s3402_s17   ;;  %s3407_s17 = smov %s2591_s18 }
 0x605   : > { %p24_p0 = scmp.ge.s32.totalorder %s27_s22, 5   ;;  %s3408_s18 = smov %s3403_s29 }
 0x607   :  { %26 = sbr.rel (!%p24_p0) target bundleno = 12 (0xc), region = 146 }
 0x60e   :  { %1760 = vsyncpa [#allocation5], 1 }
 0x60f   :  { %1762 = vsyncpa [#allocation5 + $0x1], 1 }
 0x610   :  { %1763 = vsyncpa [#allocation8], 1 }
 0x611   :  { %1765 = vsyncpa [#allocation8 + $0x1], 1 }
 0x612   :  { %1766 = vsyncpa [#allocation11], 1 }
 0x613   :  { %1767 = vsyncpa [#allocation6], 1 }
 0x614   :  { %1769 = vsyncpa [#allocation6 + $0x1], 1 }

</bundles_post_ra>
